<compile_context>
chip_gen: v7x
topology: tpu7x:2x2x1
jax: 0.10.0
libtpu: 0.0.40
codegen_flags: <defaults>
</compile_context>

<pallas_src>
import functools

import numpy as np
import jax
import jax.numpy as jnp
from jax import lax
from jax.experimental import pallas as pl
from jax.experimental.pallas import tpu as pltpu

BN_EPS = 1e-5


def _zero_border(pad_ref, H, W, C):
    """Zero only the 1-pixel border of the (H+2, W+2, C) padded scratch."""
    zrow = jnp.zeros((1, W + 2, C), jnp.float32)
    pad_ref[0:1, :, :] = zrow
    pad_ref[H + 1:H + 2, :, :] = zrow
    zcol = jnp.zeros((H, 1, C), jnp.float32)
    pad_ref[1:H + 1, 0:1, :] = zcol
    pad_ref[1:H + 1, W + 1:W + 2, :] = zcol


# --------------------------------------------------------------------------
# Kernel 1: BN1 (folded affine) -> 3x3 conv (stride 1, pad 1) -> PReLU
# 9 whole-plane bf16 MXU matmuls accumulated in f32; one coarse store (bf16).
# --------------------------------------------------------------------------
def _conv1_kernel(x_ref, w_ref, s_ref, b_ref, alpha_ref, o_ref, pad_ref,
                  *, H, W, Cin, Cout):
    _zero_border(pad_ref, H, W, Cin)

    # folded BN1 affine on real pixels only (padding stays exactly zero)
    x = x_ref[...].astype(jnp.float32)                      # (H, W, Cin)
    pad_ref[1:H + 1, 1:W + 1, :] = x * s_ref[...] + b_ref[...]

    acc = jnp.zeros((H * W, Cout), jnp.float32)
    for dy in range(3):
        for dx in range(3):
            patch = pad_ref[dy:dy + H, dx:dx + W, :]        # (H, W, Cin) f32
            patch = patch.reshape(H * W, Cin).astype(jnp.bfloat16)
            acc = acc + jnp.dot(patch, w_ref[dy, dx],
                                preferred_element_type=jnp.float32)

    alpha = alpha_ref[...]                                  # (1, Cout)
    y = jnp.where(acc >= 0.0, acc, acc * alpha)             # PReLU
    o_ref[...] = y.reshape(H, W, Cout).astype(o_ref.dtype)


def conv1_bn_prelu(x, w_bf16, s1, b1, alpha):
    N, H, W, Cin = x.shape
    Cout = w_bf16.shape[-1]
    kernel = functools.partial(_conv1_kernel, H=H, W=W, Cin=Cin, Cout=Cout)
    return pl.pallas_call(
        kernel,
        out_shape=jax.ShapeDtypeStruct((N, H, W, Cout), jnp.bfloat16),
        grid=(N,),
        in_specs=[
            pl.BlockSpec((None, H, W, Cin), lambda n: (n, 0, 0, 0)),
            pl.BlockSpec((3, 3, Cin, Cout), lambda n: (0, 0, 0, 0)),
            pl.BlockSpec((1, Cin), lambda n: (0, 0)),
            pl.BlockSpec((1, Cin), lambda n: (0, 0)),
            pl.BlockSpec((1, Cout), lambda n: (0, 0)),
        ],
        out_specs=pl.BlockSpec((None, H, W, Cout), lambda n: (n, 0, 0, 0)),
        scratch_shapes=[pltpu.VMEM((H + 2, W + 2, Cin), jnp.float32)],
        compiler_params=pltpu.CompilerParams(dimension_semantics=("parallel",)),
    )(x, w_bf16, s1, b1, alpha)


# --------------------------------------------------------------------------
# Kernel 2 (fused tail): 3x3 conv at `stride` (pad 1) -> BN2 -> SE gate
#                        -> residual add with the shortcut.
# Stride is applied directly via strided pl.ds reads of the padded scratch.
# --------------------------------------------------------------------------
def _conv2_se_add_kernel(h1_ref, short_ref, w_ref, s_ref, b_ref,
                         w1_ref, w2_ref, o_ref, pad_ref,
                         *, H, W, D, Ho, Wo, stride):
    _zero_border(pad_ref, H, W, D)
    pad_ref[1:H + 1, 1:W + 1, :] = h1_ref[...].astype(jnp.float32)

    acc = jnp.zeros((Ho * Wo, D), jnp.float32)
    for dy in range(3):
        for dx in range(3):
            if stride == 1:
                patch = pad_ref[dy:dy + Ho, dx:dx + Wo, :]
            else:
                patch = pad_ref[pl.ds(dy, Ho, stride),
                                pl.ds(dx, Wo, stride), :]   # strided load
            patch = patch.reshape(Ho * Wo, D).astype(jnp.bfloat16)
            acc = acc + jnp.dot(patch, w_ref[dy, dx],
                                preferred_element_type=jnp.float32)

    h2 = acc * s_ref[...] + b_ref[...]                      # BN2 (folded)

    # SE: global avg pool -> fc1 -> ReLU -> fc2 -> sigmoid -> channel gate
    pooled = jnp.sum(h2, axis=0, keepdims=True) * (1.0 / (Ho * Wo))  # (1, D)
    hdn = jnp.dot(pooled, w1_ref[...], preferred_element_type=jnp.float32)
    hdn = jnp.maximum(hdn, 0.0)
    g = jnp.dot(hdn, w2_ref[...], preferred_element_type=jnp.float32)
    g = 1.0 / (1.0 + jnp.exp(-g))                           # (1, D)

    out = (h2 * g).reshape(Ho, Wo, D) + short_ref[...].astype(jnp.float32)
    o_ref[...] = out.astype(o_ref.dtype)


def conv2_bn_se_add(h1, shortcut, w_bf16, s2, b2, w_fc1, w_fc2, stride):
    N, H, W, D = h1.shape
    _, Ho, Wo, _ = shortcut.shape
    Dr = w_fc1.shape[-1]
    kernel = functools.partial(_conv2_se_add_kernel, H=H, W=W, D=D,
                               Ho=Ho, Wo=Wo, stride=stride)
    return pl.pallas_call(
        kernel,
        out_shape=jax.ShapeDtypeStruct((N, Ho, Wo, D), jnp.float32),
        grid=(N,),
        in_specs=[
            pl.BlockSpec((None, H, W, D), lambda n: (n, 0, 0, 0)),
            pl.BlockSpec((None, Ho, Wo, D), lambda n: (n, 0, 0, 0)),
            pl.BlockSpec((3, 3, D, D), lambda n: (0, 0, 0, 0)),
            pl.BlockSpec((1, D), lambda n: (0, 0)),
            pl.BlockSpec((1, D), lambda n: (0, 0)),
            pl.BlockSpec((D, Dr), lambda n: (0, 0)),
            pl.BlockSpec((Dr, D), lambda n: (0, 0)),
        ],
        out_specs=pl.BlockSpec((None, Ho, Wo, D), lambda n: (n, 0, 0, 0)),
        scratch_shapes=[pltpu.VMEM((H + 2, W + 2, D), jnp.float32)],
        compiler_params=pltpu.CompilerParams(dimension_semantics=("parallel",)),
    )(h1, shortcut, w_bf16, s2, b2, w_fc1, w_fc2)


# --------------------------------------------------------------------------
# Kernel 3: shortcut branch 1x1 conv (in-kernel stride) + BN affine.
# One flattened (Ho*Wo, Cin) x (Cin, Cout) MXU matmul, single coarse store.
# --------------------------------------------------------------------------
def _conv1x1_bn_kernel(x_ref, w_ref, s_ref, b_ref, o_ref,
                       *, Ho, Wo, Cin, Cout, stride):
    if stride == 1:
        xs = x_ref[...]
    else:
        xs = x_ref[pl.ds(0, Ho, stride), pl.ds(0, Wo, stride), :]
    xm = xs.reshape(Ho * Wo, Cin).astype(jnp.bfloat16)
    y = jnp.dot(xm, w_ref[...], preferred_element_type=jnp.float32)
    y = y * s_ref[...] + b_ref[...]
    o_ref[...] = y.reshape(Ho, Wo, Cout).astype(o_ref.dtype)


def conv1x1_bn(x, w_bf16, scale, bias, stride):
    N, H, W, Cin = x.shape
    Cout = w_bf16.shape[-1]
    Ho = (H - 1) // stride + 1
    Wo = (W - 1) // stride + 1
    kernel = functools.partial(_conv1x1_bn_kernel, Ho=Ho, Wo=Wo,
                               Cin=Cin, Cout=Cout, stride=stride)
    return pl.pallas_call(
        kernel,
        out_shape=jax.ShapeDtypeStruct((N, Ho, Wo, Cout), jnp.float32),
        grid=(N,),
        in_specs=[
            pl.BlockSpec((None, H, W, Cin), lambda n: (n, 0, 0, 0)),
            pl.BlockSpec((Cin, Cout), lambda n: (0, 0)),
            pl.BlockSpec((1, Cout), lambda n: (0, 0)),
            pl.BlockSpec((1, Cout), lambda n: (0, 0)),
        ],
        out_specs=pl.BlockSpec((None, Ho, Wo, Cout), lambda n: (n, 0, 0, 0)),
        compiler_params=pltpu.CompilerParams(dimension_semantics=("parallel",)),
    )(x, w_bf16, scale, bias)


# --------------------------------------------------------------------------
# Full bottleneck_IR_SE forward.
# --------------------------------------------------------------------------
def _fold_bn(g, b, rm, rv):
    s = g / jnp.sqrt(rv + BN_EPS)
    return s, b - rm * s


def bottleneck_ir_se_forward(x_nchw, p, stride):
    x = jnp.transpose(x_nchw, (0, 2, 3, 1)).astype(jnp.float32)   # -> NHWC
    N, H, W, Cin = x.shape
    depth = p["w_conv1"].shape[-1]

    s1, b1 = _fold_bn(p["bn1_g"], p["bn1_b"], p["bn1_rm"], p["bn1_rv"])
    s2, b2 = _fold_bn(p["bn2_g"], p["bn2_b"], p["bn2_rm"], p["bn2_rv"])

    # res branch stage 1: BN1 -> conv3x3(s=1, pad=1) -> PReLU  (fused, bf16 out)
    h1 = conv1_bn_prelu(x, p["w_conv1"].astype(jnp.bfloat16),
                        s1.reshape(1, Cin), b1.reshape(1, Cin),
                        p["prelu_a"].reshape(1, depth))

    # shortcut branch
    if Cin == depth:
        # MaxPool2d(kernel=1, stride) == strided subsample (pure index glue)
        shortcut = x[:, ::stride, ::stride, :]
    else:
        ssc, bsc = _fold_bn(p["bnsc_g"], p["bnsc_b"], p["bnsc_rm"], p["bnsc_rv"])
        shortcut = conv1x1_bn(x, p["w_sc"].astype(jnp.bfloat16),
                              ssc.reshape(1, depth), bsc.reshape(1, depth),
                              stride)

    # res branch stage 2 + SE + residual add (single fused kernel, stride-aware)
    out = conv2_bn_se_add(h1, shortcut, p["w_conv2"].astype(jnp.bfloat16),
                          s2.reshape(1, depth), b2.reshape(1, depth),
                          p["w_fc1"], p["w_fc2"], stride)
    return jnp.transpose(out, (0, 3, 1, 2))                  # -> NCHW


# --------------------------------------------------------------------------
# Pure-JAX reference (same eval-mode BN semantics) for validation.
# --------------------------------------------------------------------------
def reference_forward(x_nchw, p, stride):
    x = jnp.transpose(x_nchw, (0, 2, 3, 1)).astype(jnp.float32)
    Cin = x.shape[-1]
    depth = p["w_conv1"].shape[-1]
    dn = ("NHWC", "HWIO", "NHWC")

    s1, b1 = _fold_bn(p["bn1_g"], p["bn1_b"], p["bn1_rm"], p["bn1_rv"])
    h = x * s1 + b1
    h = lax.conv_general_dilated(h, p["w_conv1"], (1, 1), ((1, 1), (1, 1)),
                                 dimension_numbers=dn)
    h = jnp.where(h >= 0, h, h * p["prelu_a"])
    h = lax.conv_general_dilated(h, p["w_conv2"], (stride, stride),
                                 ((1, 1), (1, 1)), dimension_numbers=dn)
    s2, b2 = _fold_bn(p["bn2_g"], p["bn2_b"], p["bn2_rm"], p["bn2_rv"])
    h = h * s2 + b2

    pooled = jnp.mean(h, axis=(1, 2))                      # (N, C)
    gate = jax.nn.sigmoid(jnp.maximum(pooled @ p["w_fc1"], 0.0) @ p["w_fc2"])
    res = h * gate[:, None, None, :]

    xs = x[:, ::stride, ::stride, :]
    if Cin == depth:
        sc = xs
    else:
        ssc, bsc = _fold_bn(p["bnsc_g"], p["bnsc_b"], p["bnsc_rm"], p["bnsc_rv"])
        sc = jnp.einsum("nhwc,cd->nhwd", xs, p["w_sc"]) * ssc + bsc
    return jnp.transpose(res + sc, (0, 3, 1, 2))


# --------------------------------------------------------------------------
# Deterministic parameter construction (synthetic init, no checkpoint).
# --------------------------------------------------------------------------
def make_params(key, in_channel, depth, reduction=16):
    ks = jax.random.split(key, 16)
    n = lambda k, shape, s: (jax.random.normal(k, shape, jnp.float32) * s)
    u = lambda k, shape, lo, hi: jax.random.uniform(k, shape, jnp.float32, lo, hi)
    return {
        # BatchNorm2d(in_channel)
        "bn1_g": u(ks[0], (in_channel,), 0.5, 1.5),
        "bn1_b": n(ks[1], (in_channel,), 0.1),
        "bn1_rm": n(ks[2], (in_channel,), 0.1),
        "bn1_rv": u(ks[3], (in_channel,), 0.5, 1.5),
        # Conv2d(in_channel, depth, 3, 1, 1)  -> HWIO
        "w_conv1": n(ks[4], (3, 3, in_channel, depth), 1.0 / np.sqrt(9 * in_channel)),
        # PReLU(depth)
        "prelu_a": u(ks[5], (depth,), 0.1, 0.4),
        # Conv2d(depth, depth, 3, stride, 1)  -> HWIO
        "w_conv2": n(ks[6], (3, 3, depth, depth), 1.0 / np.sqrt(9 * depth)),
        # BatchNorm2d(depth)
        "bn2_g": u(ks[7], (depth,), 0.5, 1.5),
        "bn2_b": n(ks[8], (depth,), 0.1),
        "bn2_rm": n(ks[9], (depth,), 0.1),
        "bn2_rv": u(ks[10], (depth,), 0.5, 1.5),
        # SEModule fc1/fc2 (1x1 convs, no bias) stored as (Cin, Cout) matmul mats
        "w_fc1": n(ks[11], (depth, depth // reduction), 1.0 / np.sqrt(depth)),
        "w_fc2": n(ks[12], (depth // reduction, depth), 1.0 / np.sqrt(depth // reduction)),
        # shortcut Conv2d(in_channel, depth, 1, stride) + BatchNorm2d(depth)
        "w_sc": n(ks[13], (in_channel, depth), 1.0 / np.sqrt(in_channel)),
        "bnsc_g": u(ks[14], (depth,), 0.5, 1.5),
        "bnsc_b": n(ks[15], (depth,), 0.1),
        "bnsc_rm": jnp.zeros((depth,), jnp.float32),
        "bnsc_rv": jnp.ones((depth,), jnp.float32),
    }


if __name__ == "__main__":
    key = jax.random.PRNGKey(0)

    configs = [
        # (N, Cin, depth, stride, H, W)
        (2, 32, 64, 2, 16, 16),   # conv+BN shortcut, stride-2 path
        (2, 64, 64, 1, 8, 8),     # identity (MaxPool(1,1)) shortcut, stride-1 path
    ]

    for (N, Cin, depth, stride, H, W) in configs:
        key, kx, kp = jax.random.split(key, 3)
        x = jax.random.normal(kx, (N, Cin, H, W), jnp.float32)   # NCHW like PyTorch
        params = make_params(kp, Cin, depth)

        out = jax.block_until_ready(bottleneck_ir_se_forward(x, params, stride))
        ref = jax.block_until_ready(reference_forward(x, params, stride))

        Ho = (H - 1) // stride + 1
        Wo = (W - 1) // stride + 1
        assert out.shape == (N, depth, Ho, Wo), out.shape
        err = float(np.max(np.abs(np.asarray(out) - np.asarray(ref))))
        assert np.allclose(np.asarray(out), np.asarray(ref),
                           atol=5e-2, rtol=5e-2), ("max abs err = %g" % err)

    print("KERNEL_OK")
</pallas_src>

<mosaic_0001>
module attributes {stable_mosaic.version = 11 : i64} {
  func.func @_conv1_kernel(%arg0: i32, %arg1: memref<1x16x16x32xf32, #tpu.memory_space<vmem>>, %arg2: memref<3x3x32x64xbf16, #tpu.memory_space<vmem>>, %arg3: memref<1x32xf32, #tpu.memory_space<vmem>>, %arg4: memref<1x32xf32, #tpu.memory_space<vmem>>, %arg5: memref<1x64xf32, #tpu.memory_space<vmem>>, %arg6: memref<1x16x16x64xbf16, #tpu.memory_space<vmem>>, %arg7: memref<18x18x32xf32, #tpu.memory_space<vmem>>) attributes {dimension_semantics = [#tpu.dimension_semantics<parallel>], iteration_bounds = array<i64: 2>, scalar_prefetch = 0 : i64, scratch_operands = 1 : i64, tpu.core_type = #tpu.core_type<tc>, window_params = [{transform_indices = @transform_0, window_bounds = array<i64: 1, 16, 16, 32>}, {pipeline_mode = #tpu.pipeline_mode<synchronous>, transform_indices = @transform_1, window_bounds = array<i64: 3, 3, 32, 64>}, {pipeline_mode = #tpu.pipeline_mode<synchronous>, transform_indices = @transform_2, window_bounds = array<i64: 1, 32>}, {pipeline_mode = #tpu.pipeline_mode<synchronous>, transform_indices = @transform_3, window_bounds = array<i64: 1, 32>}, {pipeline_mode = #tpu.pipeline_mode<synchronous>, transform_indices = @transform_4, window_bounds = array<i64: 1, 64>}, {transform_indices = @transform_5, window_bounds = array<i64: 1, 16, 16, 64>}]} {
    %cst = arith.constant 0.000000e+00 : f32
    %0 = vector.broadcast %cst : f32 to vector<1x18x32xf32>
    %c0 = arith.constant 0 : index
    %c0_0 = arith.constant 0 : index
    %c0_1 = arith.constant 0 : index
    %1 = vector.load %arg7[%c0, %c0_0, %c0_1] : memref<18x18x32xf32, #tpu.memory_space<vmem>>, vector<1x18x32xf32>
    tpu.vector_store %arg7[%c0, %c0_0, %c0_1], %0 {strides = array<i32>} : memref<18x18x32xf32, #tpu.memory_space<vmem>>, vector<1x18x32xf32>,
    %c17 = arith.constant 17 : index
    %c0_2 = arith.constant 0 : index
    %c0_3 = arith.constant 0 : index
    %2 = vector.load %arg7[%c17, %c0_2, %c0_3] : memref<18x18x32xf32, #tpu.memory_space<vmem>>, vector<1x18x32xf32>
    tpu.vector_store %arg7[%c17, %c0_2, %c0_3], %0 {strides = array<i32>} : memref<18x18x32xf32, #tpu.memory_space<vmem>>, vector<1x18x32xf32>,
    %cst_4 = arith.constant 0.000000e+00 : f32
    %3 = vector.broadcast %cst_4 : f32 to vector<16x1x32xf32>
    %c1 = arith.constant 1 : index
    %c0_5 = arith.constant 0 : index
    %c0_6 = arith.constant 0 : index
    %4 = vector.load %arg7[%c1, %c0_5, %c0_6] : memref<18x18x32xf32, #tpu.memory_space<vmem>>, vector<16x1x32xf32>
    tpu.vector_store %arg7[%c1, %c0_5, %c0_6], %3 {strides = array<i32>} : memref<18x18x32xf32, #tpu.memory_space<vmem>>, vector<16x1x32xf32>,
    %c1_7 = arith.constant 1 : index
    %c17_8 = arith.constant 17 : index
    %c0_9 = arith.constant 0 : index
    %5 = vector.load %arg7[%c1_7, %c17_8, %c0_9] : memref<18x18x32xf32, #tpu.memory_space<vmem>>, vector<16x1x32xf32>
    tpu.vector_store %arg7[%c1_7, %c17_8, %c0_9], %3 {strides = array<i32>} : memref<18x18x32xf32, #tpu.memory_space<vmem>>, vector<16x1x32xf32>,
    %c0_10 = arith.constant 0 : index
    %c0_11 = arith.constant 0 : index
    %c0_12 = arith.constant 0 : index
    %c0_13 = arith.constant 0 : index
    %6 = vector.load %arg1[%c0_10, %c0_11, %c0_12, %c0_13] : memref<1x16x16x32xf32, #tpu.memory_space<vmem>>, vector<1x16x16x32xf32>
    %7 = vector.shape_cast %6 : vector<1x16x16x32xf32> to vector<16x16x32xf32>
    %c0_14 = arith.constant 0 : index
    %c0_15 = arith.constant 0 : index
    %8 = vector.load %arg3[%c0_14, %c0_15] : memref<1x32xf32, #tpu.memory_space<vmem>>, vector<1x32xf32>
    %9 = vector.shape_cast %8 : vector<1x32xf32> to vector<1x1x32xf32>
    %10 = vector.broadcast %9 : vector<1x1x32xf32> to vector<16x16x32xf32>
    %11 = arith.mulf %7, %10 : vector<16x16x32xf32>
    %c0_16 = arith.constant 0 : index
    %c0_17 = arith.constant 0 : index
    %12 = vector.load %arg4[%c0_16, %c0_17] : memref<1x32xf32, #tpu.memory_space<vmem>>, vector<1x32xf32>
    %13 = vector.shape_cast %12 : vector<1x32xf32> to vector<1x1x32xf32>
    %14 = vector.broadcast %13 : vector<1x1x32xf32> to vector<16x16x32xf32>
    %15 = arith.addf %11, %14 : vector<16x16x32xf32>
    %c1_18 = arith.constant 1 : index
    %c1_19 = arith.constant 1 : index
    %c0_20 = arith.constant 0 : index
    %16 = vector.load %arg7[%c1_18, %c1_19, %c0_20] : memref<18x18x32xf32, #tpu.memory_space<vmem>>, vector<16x16x32xf32>
    tpu.vector_store %arg7[%c1_18, %c1_19, %c0_20], %15 {strides = array<i32>} : memref<18x18x32xf32, #tpu.memory_space<vmem>>, vector<16x16x32xf32>,
    %cst_21 = arith.constant 0.000000e+00 : f32
    %17 = vector.broadcast %cst_21 : f32 to vector<256x64xf32>
    %c0_22 = arith.constant 0 : index
    %c0_23 = arith.constant 0 : index
    %c0_24 = arith.constant 0 : index
    %18 = vector.load %arg7[%c0_22, %c0_23, %c0_24] : memref<18x18x32xf32, #tpu.memory_space<vmem>>, vector<16x16x32xf32>
    %19 = vector.shape_cast %18 : vector<16x16x32xf32> to vector<256x32xf32>
    %20 = arith.truncf %19 : vector<256x32xf32> to vector<256x32xbf16>
    %c0_25 = arith.constant 0 : index
    %c0_26 = arith.constant 0 : index
    %c0_27 = arith.constant 0 : index
    %c0_28 = arith.constant 0 : index
    %21 = vector.load %arg2[%c0_25, %c0_26, %c0_27, %c0_28] : memref<3x3x32x64xbf16, #tpu.memory_space<vmem>>, vector<1x1x32x64xbf16>
    %22 = vector.shape_cast %21 : vector<1x1x32x64xbf16> to vector<32x64xbf16>
    %cst_29 = arith.constant dense<0.000000e+00> : vector<256x64xf32>
    %23 = tpu.matmul %20, %22, %cst_29 {dimension_numbers = #tpu.dot_dimension_numbers<[1], [0], [0], [1], [0, 0, 1, 1], [], []>} : vector<256x32xbf16>, vector<32x64xbf16>, vector<256x64xf32> -> vector<256x64xf32>
    %24 = arith.addf %17, %23 : vector<256x64xf32>
    %c0_30 = arith.constant 0 : index
    %c1_31 = arith.constant 1 : index
    %c0_32 = arith.constant 0 : index
    %25 = vector.load %arg7[%c0_30, %c1_31, %c0_32] : memref<18x18x32xf32, #tpu.memory_space<vmem>>, vector<16x16x32xf32>
    %26 = vector.shape_cast %25 : vector<16x16x32xf32> to vector<256x32xf32>
    %27 = arith.truncf %26 : vector<256x32xf32> to vector<256x32xbf16>
    %c0_33 = arith.constant 0 : index
    %c1_34 = arith.constant 1 : index
    %c0_35 = arith.constant 0 : index
    %c0_36 = arith.constant 0 : index
    %28 = vector.load %arg2[%c0_33, %c1_34, %c0_35, %c0_36] : memref<3x3x32x64xbf16, #tpu.memory_space<vmem>>, vector<1x1x32x64xbf16>
    %29 = vector.shape_cast %28 : vector<1x1x32x64xbf16> to vector<32x64xbf16>
    %cst_37 = arith.constant dense<0.000000e+00> : vector<256x64xf32>
    %30 = tpu.matmul %27, %29, %cst_37 {dimension_numbers = #tpu.dot_dimension_numbers<[1], [0], [0], [1], [0, 0, 1, 1], [], []>} : vector<256x32xbf16>, vector<32x64xbf16>, vector<256x64xf32> -> vector<256x64xf32>
    %31 = arith.addf %24, %30 : vector<256x64xf32>
    %c0_38 = arith.constant 0 : index
    %c2 = arith.constant 2 : index
    %c0_39 = arith.constant 0 : index
    %32 = vector.load %arg7[%c0_38, %c2, %c0_39] : memref<18x18x32xf32, #tpu.memory_space<vmem>>, vector<16x16x32xf32>
    %33 = vector.shape_cast %32 : vector<16x16x32xf32> to vector<256x32xf32>
    %34 = arith.truncf %33 : vector<256x32xf32> to vector<256x32xbf16>
    %c0_40 = arith.constant 0 : index
    %c2_41 = arith.constant 2 : index
    %c0_42 = arith.constant 0 : index
    %c0_43 = arith.constant 0 : index
    %35 = vector.load %arg2[%c0_40, %c2_41, %c0_42, %c0_43] : memref<3x3x32x64xbf16, #tpu.memory_space<vmem>>, vector<1x1x32x64xbf16>
    %36 = vector.shape_cast %35 : vector<1x1x32x64xbf16> to vector<32x64xbf16>
    %cst_44 = arith.constant dense<0.000000e+00> : vector<256x64xf32>
    %37 = tpu.matmul %34, %36, %cst_44 {dimension_numbers = #tpu.dot_dimension_numbers<[1], [0], [0], [1], [0, 0, 1, 1], [], []>} : vector<256x32xbf16>, vector<32x64xbf16>, vector<256x64xf32> -> vector<256x64xf32>
    %38 = arith.addf %31, %37 : vector<256x64xf32>
    %c1_45 = arith.constant 1 : index
    %c0_46 = arith.constant 0 : index
    %c0_47 = arith.constant 0 : index
    %39 = vector.load %arg7[%c1_45, %c0_46, %c0_47] : memref<18x18x32xf32, #tpu.memory_space<vmem>>, vector<16x16x32xf32>
    %40 = vector.shape_cast %39 : vector<16x16x32xf32> to vector<256x32xf32>
    %41 = arith.truncf %40 : vector<256x32xf32> to vector<256x32xbf16>
    %c1_48 = arith.constant 1 : index
    %c0_49 = arith.constant 0 : index
    %c0_50 = arith.constant 0 : index
    %c0_51 = arith.constant 0 : index
    %42 = vector.load %arg2[%c1_48, %c0_49, %c0_50, %c0_51] : memref<3x3x32x64xbf16, #tpu.memory_space<vmem>>, vector<1x1x32x64xbf16>
    %43 = vector.shape_cast %42 : vector<1x1x32x64xbf16> to vector<32x64xbf16>
    %cst_52 = arith.constant dense<0.000000e+00> : vector<256x64xf32>
    %44 = tpu.matmul %41, %43, %cst_52 {dimension_numbers = #tpu.dot_dimension_numbers<[1], [0], [0], [1], [0, 0, 1, 1], [], []>} : vector<256x32xbf16>, vector<32x64xbf16>, vector<256x64xf32> -> vector<256x64xf32>
    %45 = arith.addf %38, %44 : vector<256x64xf32>
    %c1_53 = arith.constant 1 : index
    %c1_54 = arith.constant 1 : index
    %c0_55 = arith.constant 0 : index
    %46 = vector.load %arg7[%c1_53, %c1_54, %c0_55] : memref<18x18x32xf32, #tpu.memory_space<vmem>>, vector<16x16x32xf32>
    %47 = vector.shape_cast %46 : vector<16x16x32xf32> to vector<256x32xf32>
    %48 = arith.truncf %47 : vector<256x32xf32> to vector<256x32xbf16>
    %c1_56 = arith.constant 1 : index
    %c1_57 = arith.constant 1 : index
    %c0_58 = arith.constant 0 : index
    %c0_59 = arith.constant 0 : index
    %49 = vector.load %arg2[%c1_56, %c1_57, %c0_58, %c0_59] : memref<3x3x32x64xbf16, #tpu.memory_space<vmem>>, vector<1x1x32x64xbf16>
    %50 = vector.shape_cast %49 : vector<1x1x32x64xbf16> to vector<32x64xbf16>
    %cst_60 = arith.constant dense<0.000000e+00> : vector<256x64xf32>
    %51 = tpu.matmul %48, %50, %cst_60 {dimension_numbers = #tpu.dot_dimension_numbers<[1], [0], [0], [1], [0, 0, 1, 1], [], []>} : vector<256x32xbf16>, vector<32x64xbf16>, vector<256x64xf32> -> vector<256x64xf32>
    %52 = arith.addf %45, %51 : vector<256x64xf32>
    %c1_61 = arith.constant 1 : index
    %c2_62 = arith.constant 2 : index
    %c0_63 = arith.constant 0 : index
    %53 = vector.load %arg7[%c1_61, %c2_62, %c0_63] : memref<18x18x32xf32, #tpu.memory_space<vmem>>, vector<16x16x32xf32>
    %54 = vector.shape_cast %53 : vector<16x16x32xf32> to vector<256x32xf32>
    %55 = arith.truncf %54 : vector<256x32xf32> to vector<256x32xbf16>
    %c1_64 = arith.constant 1 : index
    %c2_65 = arith.constant 2 : index
    %c0_66 = arith.constant 0 : index
    %c0_67 = arith.constant 0 : index
    %56 = vector.load %arg2[%c1_64, %c2_65, %c0_66, %c0_67] : memref<3x3x32x64xbf16, #tpu.memory_space<vmem>>, vector<1x1x32x64xbf16>
    %57 = vector.shape_cast %56 : vector<1x1x32x64xbf16> to vector<32x64xbf16>
    %cst_68 = arith.constant dense<0.000000e+00> : vector<256x64xf32>
    %58 = tpu.matmul %55, %57, %cst_68 {dimension_numbers = #tpu.dot_dimension_numbers<[1], [0], [0], [1], [0, 0, 1, 1], [], []>} : vector<256x32xbf16>, vector<32x64xbf16>, vector<256x64xf32> -> vector<256x64xf32>
    %59 = arith.addf %52, %58 : vector<256x64xf32>
    %c2_69 = arith.constant 2 : index
    %c0_70 = arith.constant 0 : index
    %c0_71 = arith.constant 0 : index
    %60 = vector.load %arg7[%c2_69, %c0_70, %c0_71] : memref<18x18x32xf32, #tpu.memory_space<vmem>>, vector<16x16x32xf32>
    %61 = vector.shape_cast %60 : vector<16x16x32xf32> to vector<256x32xf32>
    %62 = arith.truncf %61 : vector<256x32xf32> to vector<256x32xbf16>
    %c2_72 = arith.constant 2 : index
    %c0_73 = arith.constant 0 : index
    %c0_74 = arith.constant 0 : index
    %c0_75 = arith.constant 0 : index
    %63 = vector.load %arg2[%c2_72, %c0_73, %c0_74, %c0_75] : memref<3x3x32x64xbf16, #tpu.memory_space<vmem>>, vector<1x1x32x64xbf16>
    %64 = vector.shape_cast %63 : vector<1x1x32x64xbf16> to vector<32x64xbf16>
    %cst_76 = arith.constant dense<0.000000e+00> : vector<256x64xf32>
    %65 = tpu.matmul %62, %64, %cst_76 {dimension_numbers = #tpu.dot_dimension_numbers<[1], [0], [0], [1], [0, 0, 1, 1], [], []>} : vector<256x32xbf16>, vector<32x64xbf16>, vector<256x64xf32> -> vector<256x64xf32>
    %66 = arith.addf %59, %65 : vector<256x64xf32>
    %c2_77 = arith.constant 2 : index
    %c1_78 = arith.constant 1 : index
    %c0_79 = arith.constant 0 : index
    %67 = vector.load %arg7[%c2_77, %c1_78, %c0_79] : memref<18x18x32xf32, #tpu.memory_space<vmem>>, vector<16x16x32xf32>
    %68 = vector.shape_cast %67 : vector<16x16x32xf32> to vector<256x32xf32>
    %69 = arith.truncf %68 : vector<256x32xf32> to vector<256x32xbf16>
    %c2_80 = arith.constant 2 : index
    %c1_81 = arith.constant 1 : index
    %c0_82 = arith.constant 0 : index
    %c0_83 = arith.constant 0 : index
    %70 = vector.load %arg2[%c2_80, %c1_81, %c0_82, %c0_83] : memref<3x3x32x64xbf16, #tpu.memory_space<vmem>>, vector<1x1x32x64xbf16>
    %71 = vector.shape_cast %70 : vector<1x1x32x64xbf16> to vector<32x64xbf16>
    %cst_84 = arith.constant dense<0.000000e+00> : vector<256x64xf32>
    %72 = tpu.matmul %69, %71, %cst_84 {dimension_numbers = #tpu.dot_dimension_numbers<[1], [0], [0], [1], [0, 0, 1, 1], [], []>} : vector<256x32xbf16>, vector<32x64xbf16>, vector<256x64xf32> -> vector<256x64xf32>
    %73 = arith.addf %66, %72 : vector<256x64xf32>
    %c2_85 = arith.constant 2 : index
    %c2_86 = arith.constant 2 : index
    %c0_87 = arith.constant 0 : index
    %74 = vector.load %arg7[%c2_85, %c2_86, %c0_87] : memref<18x18x32xf32, #tpu.memory_space<vmem>>, vector<16x16x32xf32>
    %75 = vector.shape_cast %74 : vector<16x16x32xf32> to vector<256x32xf32>
    %76 = arith.truncf %75 : vector<256x32xf32> to vector<256x32xbf16>
    %c2_88 = arith.constant 2 : index
    %c2_89 = arith.constant 2 : index
    %c0_90 = arith.constant 0 : index
    %c0_91 = arith.constant 0 : index
    %77 = vector.load %arg2[%c2_88, %c2_89, %c0_90, %c0_91] : memref<3x3x32x64xbf16, #tpu.memory_space<vmem>>, vector<1x1x32x64xbf16>
    %78 = vector.shape_cast %77 : vector<1x1x32x64xbf16> to vector<32x64xbf16>
    %cst_92 = arith.constant dense<0.000000e+00> : vector<256x64xf32>
    %79 = tpu.matmul %76, %78, %cst_92 {dimension_numbers = #tpu.dot_dimension_numbers<[1], [0], [0], [1], [0, 0, 1, 1], [], []>} : vector<256x32xbf16>, vector<32x64xbf16>, vector<256x64xf32> -> vector<256x64xf32>
    %80 = arith.addf %73, %79 : vector<256x64xf32>
    %c0_93 = arith.constant 0 : index
    %c0_94 = arith.constant 0 : index
    %81 = vector.load %arg5[%c0_93, %c0_94] : memref<1x64xf32, #tpu.memory_space<vmem>>, vector<1x64xf32>
    %cst_95 = arith.constant 0.000000e+00 : f32
    %82 = vector.broadcast %cst_95 : f32 to vector<256x64xf32>
    %83 = arith.cmpf oge, %80, %82 : vector<256x64xf32>
    %84 = vector.broadcast %81 : vector<1x64xf32> to vector<256x64xf32>
    %85 = arith.mulf %80, %84 : vector<256x64xf32>
    %86 = arith.select %83, %80, %85 : vector<256x64xi1>, vector<256x64xf32>
    %87 = vector.shape_cast %86 : vector<256x64xf32> to vector<16x16x64xf32>
    %88 = arith.truncf %87 : vector<16x16x64xf32> to vector<16x16x64xbf16>
    %c0_96 = arith.constant 0 : index
    %c0_97 = arith.constant 0 : index
    %c0_98 = arith.constant 0 : index
    %c0_99 = arith.constant 0 : index
    %89 = vector.load %arg6[%c0_96, %c0_97, %c0_98, %c0_99] : memref<1x16x16x64xbf16, #tpu.memory_space<vmem>>, vector<1x16x16x64xbf16>
    %90 = vector.shape_cast %89 : vector<1x16x16x64xbf16> to vector<16x16x64xbf16>
    %91 = vector.shape_cast %88 : vector<16x16x64xbf16> to vector<1x16x16x64xbf16>
    tpu.vector_store %arg6[%c0_96, %c0_97, %c0_98, %c0_99], %91 {strides = array<i32>} : memref<1x16x16x64xbf16, #tpu.memory_space<vmem>>, vector<1x16x16x64xbf16>,
    return
  }
  func.func @transform_0(%arg0: i32) -> (i32, i32, i32, i32) {
    %c0_i32 = arith.constant 0 : i32
    %c0_i32_0 = arith.constant 0 : i32
    %c0_i32_1 = arith.constant 0 : i32
    %c0_i32_2 = arith.constant 0 : i32
    return %arg0, %c0_i32, %c0_i32_0, %c0_i32_1 : i32, i32, i32, i32
  }
  func.func @transform_1(%arg0: i32) -> (i32, i32, i32, i32) {
    %c0_i32 = arith.constant 0 : i32
    %c0_i32_0 = arith.constant 0 : i32
    %c0_i32_1 = arith.constant 0 : i32
    %c0_i32_2 = arith.constant 0 : i32
    %c0_i32_3 = arith.constant 0 : i32
    return %c0_i32, %c0_i32_0, %c0_i32_1, %c0_i32_2 : i32, i32, i32, i32
  }
  func.func @transform_2(%arg0: i32) -> (i32, i32) {
    %c0_i32 = arith.constant 0 : i32
    %c0_i32_0 = arith.constant 0 : i32
    %c0_i32_1 = arith.constant 0 : i32
    return %c0_i32, %c0_i32_0 : i32, i32
  }
  func.func @transform_3(%arg0: i32) -> (i32, i32) {
    %c0_i32 = arith.constant 0 : i32
    %c0_i32_0 = arith.constant 0 : i32
    %c0_i32_1 = arith.constant 0 : i32
    return %c0_i32, %c0_i32_0 : i32, i32
  }
  func.func @transform_4(%arg0: i32) -> (i32, i32) {
    %c0_i32 = arith.constant 0 : i32
    %c0_i32_0 = arith.constant 0 : i32
    %c0_i32_1 = arith.constant 0 : i32
    return %c0_i32, %c0_i32_0 : i32, i32
  }
  func.func @transform_5(%arg0: i32) -> (i32, i32, i32, i32) {
    %c0_i32 = arith.constant 0 : i32
    %c0_i32_0 = arith.constant 0 : i32
    %c0_i32_1 = arith.constant 0 : i32
    %c0_i32_2 = arith.constant 0 : i32
    return %arg0, %c0_i32, %c0_i32_0, %c0_i32_1 : i32, i32, i32, i32
  }
}

</mosaic_0001>

<bundles_post_ra>
// kernel: tpu_custom_call.1
= control target key start
LH: loop header
LB: loop body
LE: loop exit
PB: predicated region body
PF: predicated region fallthrough
CT: control target
= control target key end

     0   :  { %10 = vsyncpa [#allocation4], 0  ;;  %s5647_s0 = inlined_call_operand.hbm [shape: f32[2,16,16,32], index: 0, kind: input, shape index: {}]   ;;  %s5648_s1 = inlined_call_operand.hbm [shape: bf16[3,3,32,64], index: 1, kind: input, shape index: {}]   ;;  %s5649_s2 = inlined_call_operand.vmem [shape: f32[1,32], index: 2, kind: input, shape index: {}]   ;;  %s5650_s3 = inlined_call_operand.vmem [shape: f32[1,32], index: 3, kind: input, shape index: {}]   ;;  %s5651_s4 = inlined_call_operand.vmem [shape: f32[1,64], index: 4, kind: input, shape index: {}]   ;;  %s5652_s5 = inlined_call_operand.hbm [shape: bf16[2,16,16,64], index: 5, kind: output, shape index: {}]  }
   0x1   :  { %12 = vsyncpa [#allocation4 + $0x1], 0 }
   0x2   :  { %13 = vsyncpa [#allocation7], 0 }
   0x3   :  { %14 = vsyncpa [#allocation5], 0 }
   0x4   :  { %16 = vsyncpa [#allocation5 + $0x1], 0  ;;  %s4740_s18 = smov 0   ;;  %s4742_s19 = smov 0  }
   0x5   :  { %s4744_s20 = smov 0   ;;  %s4746_s21 = smov 0  }
   0x6 LB: > { %s4761_s22 = sadd.s32 4294967295, %s4698_s21   ;;  %s3495_s23 = sadd.s32 4294967294, %s4698_s21   ;;  %s4698_s21 = sphi %s4746_s21, %s5672_s21   ;;  %s4694_s20 = sphi %s4744_s20, %s5671_s20   ;;  %s4690_s19 = sphi %s4742_s19, %s5670_s19   ;;  %s4686_s18 = sphi %s4740_s18, %s5669_s18  }
   0x7   : > { %p42_p0 = scmp.ne.s32.totalorder %s4690_s19, %s4686_s18  ;;  %p5653_p1 = scmp.eq.s32.totalorder %s4761_s22, 0 }
   0x8   : > { %p156_p3 = scmp.eq.s32.totalorder %s3495_s23, 1  ;;  %p3496_p5 = scmp.ge.s32.totalorder %s4698_s21, 1 }
   0x9   : > { %p4770_p4 = por %p5653_p1, %p42_p0  ;;  %p163_p7 = scmp.lt.s32.totalorder %s4698_s21, 3 }
   0xa   : > { %p4775_p6 = por %p156_p3, %p42_p0  ;;  %s4700_s27 = smov [#allocation6]  }
   0xb   : > { %s5656_s24 = scalar_select %p4770_p4, 1, 0 }
   0xc   : > { %s5657_s25 = scalar_select %p4775_p6, 1, 0 }
   0xd   : > { %p4780_p8 = pnand %p3496_p5, %p163_p7  ;;  %s175_s28 = sshll.u32 %s4700_s27, 4  ;;  %s4784_s28 = int_to_ptr.vmem [resolvable:$true] %s175_s28 }
   0xe   : > { %s4796_s30 = sadd.s32 1, %s4698_s21   ;;  %s29_s6 = sadd.s32 1, %s4694_s20 }
   0xf   : > { %s5658_s26 = scalar_select %p4780_p8, 1, 0 }
  0x10   : > { %p4496_p9 = pneg %p4780_p8  ;;  %s26_s7 = ssub.s32 %s4698_s21, %s4796_s30 }
  0x11   : > { %s4570_s10 = scalar_lea.hbm %s5648_s1, 2304 }
  0x12   : > { %p4791_p11 = pnand %p4496_p9, %p5653_p1  ;;  %p4571_p12 = scmp.ne.s32.totalorder %s5648_s1, %s4570_s10 }
  0x13   : > { %p4577_p5 = scmp.lt.u32.totalorder %s4570_s10, %s5648_s1 }
  0x14   : > { %p4572_p13 = pneg %p4791_p11 }
  0x16   : > { %p4573_p0 = pnand %p4572_p13, %p4571_p12 }
  0x18   : > { %p4574_p3 = pneg %p4573_p0 }
  0x1a   : > { %p4579_p7 = pnand %p4577_p5, %p4574_p3 }
  0x1c   : > { %4582 = shalt.err (!%p4579_p7)
}
  0x1d   : > { %s4583_s15 = scalar_lea.vmem %s4784_s28, 2304  ;;  %p4591_p2 = scmp.lt.s32.totalorder %s4784_s28, %s4784_s28 }
  0x1e   : > { %p4584_p9 = scmp.ne.s32.totalorder %s4784_s28, %s4583_s15  ;;  %p4592_p6 = scmp.lt.s32.totalorder %s4583_s15, %s4583_s15 }
  0x20   : > { %p4586_p10 = pnand %p4584_p9, %p4572_p13  ;;  %p4593_p4 = por %p4592_p6, %p4591_p2 }
  0x22   : > { %p4587_p1 = pneg %p4586_p10 }
  0x24   : > { %p4594_p8 = pnand %p4593_p4, %p4587_p1 }
  0x26   : > { %4597 = shalt.err (!%p4594_p8)
}
  0x27   : > { %s4701_s16 = smov 64   ;;  %s4702_s17 = smov 4  }
  0x28   : > { %4499 = dma.hbm_to_vmem [thread:$0]  (!%p4791_p11), %s5648_s1, 2304, %s4784_s28, [#allocation7], %s4701_s16, %s4701_s16, %s4702_s17  }
  0x29   : > { %p27_p2 = scmp.eq.s32.totalorder %s26_s7, 0  ;;  %p36_p1 = scmp.ne.s32.totalorder %s4694_s20, %s4690_s19 }
  0x2a   : > { %p37_p4 = scmp.eq.s32.totalorder %s4698_s21, 0  ;;  %p4509_p6 = scmp.lt.s32.totalorder %s4698_s21, 2 }
  0x2b   : > { %s4827_s8 = scalar_select %p27_p2, %s4694_s20, %s29_s6  }
  0x2c   : > { %p38_p8 = por %p37_p4, %p36_p1  ;;  %p5660_p10 = scmp.eq.s32.totalorder %s4761_s22, 1 }
  0x2d   : > { %s198_s10 = sand.u32 1, %s4694_s20   ;;  %s3708_s11 = sshll.u32 %s4698_s21, 12 }
  0x2e   : > { %p4831_p12 = por %p5660_p10, %p36_p1  ;;  %s3499_s12 = sshll.u32 %s198_s10, 8 }
  0x2f   : > { %s4840_s14 = scalar_lea.hbm %s5647_s0, %s3708_s11  ;;  %s202_s28 = scalar_lea.vmem [#allocation3], %s3499_s12 }
  0x30   : > { %s209_s6 = sshll.u32 %s202_s28, 4  ;;  %p4842_p11 = pnand %p4509_p6, %p38_p8  ;;  %s4846_s6 = int_to_ptr.vmem [resolvable:$true] %s209_s6 }
  0x31   : > { %s4848_s15 = scalar_lea.sflag [#allocation4], %s198_s10  ;;  %s4598_s16 = scalar_lea.hbm %s4840_s14, 4096 }
  0x32   : > { %p4599_p13 = scmp.ne.s32.totalorder %s4840_s14, %s4598_s16  ;;  %p4600_p0 = pneg %p4842_p11 }
  0x33   : > { %s4603_s27 = scalar_lea.hbm %s5647_s0, 8192  ;;  %p4604_p7 = scmp.lt.u32.totalorder %s4840_s14, %s5647_s0 }
  0x34   : > { %p4601_p3 = pnand %p4600_p0, %p4599_p13  ;;  %p4605_p9 = scmp.lt.u32.totalorder %s4603_s27, %s4598_s16 }
  0x35   : > { %p4607_p1 = scmp.lt.u32.totalorder %s4598_s16, %s4840_s14 }
  0x36   : > { %p4602_p5 = pneg %p4601_p3  ;;  %p4606_p2 = por %p4605_p9, %p4604_p7 }
  0x38   : > { %p4608_p4 = por %p4607_p1, %p4606_p2 }
  0x3a   : > { %p4609_p6 = pnand %p4608_p4, %p4602_p5 }
  0x3c   : > { %4612 = shalt.err (!%p4609_p6)
}
  0x3d   : > { %s4613_s10 = scalar_lea.vmem %s4846_s6, 4096  ;;  %s4703_s29 = smov [#allocation3]  }
  0x3e   : > { %p4614_p8 = scmp.ne.s32.totalorder %s4846_s6, %s4613_s10  ;;  %s4618_s13 = sshll.u32 %s4703_s29, 4  ;;  %s4619_s13 = int_to_ptr.vmem [resolvable:$false] %s4618_s13 }
  0x3f   : > { %s4620_s28 = scalar_lea.vmem %s4619_s13, 8192  ;;  %p4621_p3 = scmp.lt.s32.totalorder %s4846_s6, %s4619_s13 }
  0x40   : > { %p4616_p10 = pnand %p4614_p8, %p4600_p0  ;;  %p4622_p7 = scmp.lt.s32.totalorder %s4620_s28, %s4613_s10 }
  0x42   : > { %p4617_p13 = pneg %p4616_p10  ;;  %p4623_p9 = por %p4622_p7, %p4621_p3 }
  0x44   : > { %p4624_p2 = pnand %p4623_p9, %p4617_p13 }
  0x46   : > { %4627 = shalt.err (!%p4624_p2)
}
  0x47   : > { %s4704_s16 = smov 128   ;;  %s4705_s17 = smov 8  }
  0x48   : > { %4503 = dma.hbm_to_vmem [thread:$0]  (!%p4842_p11), %s4840_s14, 4096, %s4846_s6, %s4848_s15, %s4704_s16, %s4704_s16, %s4705_s17  }
  0x49   : > { %p5663_p0 = scmp.ne.s32.totalorder %s5658_s26, 0 }
  0x4a   : > { %s4879_s23 = sand.u32 (!%p5663_p0), 1, %s4690_s19   ;;  %p5664_p5 = scmp.ne.s32.totalorder (!%p5663_p0), %s5656_s24, 0 }
  0x4b   : > { %221 = sbr.rel (%p5663_p0) target bundleno = 636 (0x27c), region = 40  ;;  %s3503_s27 = sshll.u32 (!%p5663_p0), %s4879_s23, 8 }
  0x4c   : > { %s224_s11 = scalar_lea.sflag (!%p5663_p0), [#allocation4], %s4879_s23  ;;  %s4883_s12 = scalar_lea.vmem (!%p5663_p0), [#allocation3], %s3503_s27 }
  0x52   : > { %4673 = dma.done.wait (%p5664_p5), %s224_s11, 4096  }
  0x53   : > { %4675 = vsyncadd (%p5664_p5), %s224_s11, 4294963200  ;;  %p5665_p11 = scmp.eq.s32.totalorder %s4761_s22, 0 }
  0x55   : > { %4677 = dma.done.wait (%p5665_p11), [#allocation7], 2304   ;;  %p5666_p1 = pmov %p5665_p11 }
  0x56   : > { %vm259_vm0 = vcmask 261120   ;;  %vm262_vm1 = vcmask 254976   ;;  %vm269_vm2 = vcmask 253952   ;;  %v4706_v0 = vmov 0.0   ;;  %v4552_v1 = vld [vmem:[#allocation6 + $0x10] sm:$0xff]   ;;  %v4929_v2 = vld [vmem:[#allocation6 + $0x40] sm:$0xff]  }
  0x57   : > { %4679 = vsyncadd (%p5666_p1), [#allocation7], 4294964992  ;;  %260 = vst.msk [vmem:[#allocation2] sm:$0xff] %vm259_vm0, %v4706_v0  ;;  %3904 = vmatprep.subr.bf16.mxu1 %v4552_v1  ;;  %v4554_v3 = vld [vmem:[#allocation6 + $0x18] sm:$0xff]   ;;  %4048 = vmatprep.subr.bf16.mxu0 %v4929_v2  ;;  %v4932_v4 = vld [vmem:[#allocation6 + $0x48] sm:$0xff]   ;;  %s3505_s10 = sshll.u32 %s4879_s23, 7 }
  0x58   : > { %261 = vst.msk [vmem:[#allocation2 + $0x8] sm:$0xff] %vm259_vm0, %v4706_v0  ;;  %265 = vst.msk [vmem:[#allocation2 + $0x198] sm:$0xff] %vm259_vm0, %v4706_v0  ;;  %3905 = vmatpush3.bf16.msra.mxu1 %v4552_v1  ;;  %4049 = vmatpush3.bf16.msra.mxu0 %v4929_v2  ;;  %v302_v7 = vld [vmem:[%s4883_s12] sm:$0xff]  ;;  %v303_v9 = vld [vmem:[%s4883_s12 + $0x8] sm:$0xff]  ;;  %vm3365_vm5 = vcmask 519168   ;;  %s5494_s29 = scalar_lea.vmem [#allocation8], %s3505_s10 }
  0x59   : > { %263 = vst.msk [vmem:[#allocation2 + $0x10] sm:$0x3] %vm262_vm1, %v4706_v0  ;;  %267 = vst.msk [vmem:[#allocation2 + $0x1a8] sm:$0x3] %vm262_vm1, %v4706_v0  ;;  %3906 = vmatprep.subr.bf16.mxu1 %v4554_v3  ;;  %4050 = vmatprep.subr.bf16.mxu0 %v4932_v4  ;;  %v4941_v10 = vld [vmem:[%s5649_s2] ss:$0 sm:$0xff] }
  0x5a   : > { %266 = vst.msk [vmem:[#allocation2 + $0x1a0] sm:$0xff] %vm259_vm0, %v4706_v0  ;;  %v4946_v11 = vld [vmem:[%s5650_s3] ss:$0 sm:$0xff]  ;;  %v341_v12 = vmul.f32 %v4941_v10, %v302_v7  ;;  %v342_v13 = vmul.f32 %v4941_v10, %v303_v9  ;;  %v4950_v14 = vld [vmem:[#allocation6] sm:$0xff]   ;;  %v305_v19 = vld [vmem:[%s4883_s12 + $0x18] sm:$0xff]  ;;  %s3741_s13 = sshll.u32 %s4761_s22, 11 }
  0x5b   : > { %286 = vst.msk [vmem:[#allocation2 + $0x29] sm:$0x1] %vm269_vm2, %v4706_v0  ;;  %270 = vst.msk [vmem:[#allocation2 + $0x18] sm:$0x1] %vm269_vm2, %v4706_v0  ;;  %v4953_v15 = vld [vmem:[#allocation6 + $0x50] sm:$0xff]   ;;  %v306_v20 = vld [vmem:[%s4883_s12 + $0x20] sm:$0xff]  ;;  %v344_v22 = vmul.f32 %v4941_v10, %v305_v19  ;;  %s5595_s27 = scalar_lea.hbm %s5652_s5, %s3741_s13 }
  0x5c   : > { %271 = vst.msk [vmem:[#allocation2 + $0x30] sm:$0x1] %vm269_vm2, %v4706_v0  ;;  %272 = vst.msk [vmem:[#allocation2 + $0x48] sm:$0x1] %vm269_vm2, %v4706_v0  ;;  %3907 = vmatpush3.bf16.msra.mxu1 %v4554_v3  ;;  %4051 = vmatpush3.bf16.msra.mxu0 %v4932_v4  ;;  %v380_v16 = vadd.f32 %v4946_v11, %v341_v12  ;;  %v381_v17 = vadd.f32 %v4946_v11, %v342_v13  ;;  %v304_v18 = vld [vmem:[%s4883_s12 + $0x10] sm:$0xff]  ;;  %v307_v23 = vld [vmem:[%s4883_s12 + $0x28] sm:$0xff] }
  0x5d   : > { %273 = vst.msk [vmem:[#allocation2 + $0x60] sm:$0x1] %vm269_vm2, %v4706_v0  ;;  %274 = vst.msk [vmem:[#allocation2 + $0x78] sm:$0x1] %vm269_vm2, %v4706_v0  ;;  %3940 = vmatprep.subr.bf16.mxu1 %v4950_v14  ;;  %4084 = vmatprep.subr.bf16.mxu0 %v4953_v15  ;;  %v343_v21 = vmul.f32 %v4941_v10, %v304_v18  ;;  %v345_v24 = vmul.f32 %v4941_v10, %v306_v20  ;;  %v308_v25 = vld [vmem:[%s4883_s12 + $0x30] sm:$0xff]  ;;  %v309_v26 = vld [vmem:[%s4883_s12 + $0x38] sm:$0xff] }
  0x5e   : > { %275 = vst.msk [vmem:[#allocation2 + $0x90] sm:$0x1] %vm269_vm2, %v4706_v0  ;;  %276 = vst.msk [vmem:[#allocation2 + $0xa8] sm:$0x1] %vm269_vm2, %v4706_v0  ;;  %v346_v27 = vmul.f32 %v4941_v10, %v307_v23  ;;  %v347_v28 = vmul.f32 %v4941_v10, %v308_v25  ;;  %v348_v29 = vmul.f32 %v4941_v10, %v309_v26  ;;  %v310_v30 = vld [vmem:[%s4883_s12 + $0x40] sm:$0xff]  ;;  %v311_v31 = vld [vmem:[%s4883_s12 + $0x48] sm:$0xff] }
  0x5f   : > { %277 = vst.msk [vmem:[#allocation2 + $0xc0] sm:$0x1] %vm269_vm2, %v4706_v0  ;;  %278 = vst.msk [vmem:[#allocation2 + $0xd8] sm:$0x1] %vm269_vm2, %v4706_v0  ;;  %v496_v5 = vld [vmem:[#allocation2 + $0x1] sm:$0xff]  ;;  %v382_v32 = vadd.f32 %v4946_v11, %v343_v21  ;;  %v383_v33 = vadd.f32 %v4946_v11, %v344_v22  ;;  %v384_v34 = vadd.f32 %v4946_v11, %v345_v24  ;;  %v314_v42 = vld [vmem:[%s4883_s12 + $0x60] sm:$0xff] }
  0x60   : > { %279 = vst.msk [vmem:[#allocation2 + $0xf0] sm:$0x1] %vm269_vm2, %v4706_v0  ;;  %280 = vst.msk [vmem:[#allocation2 + $0x108] sm:$0x1] %vm269_vm2, %v4706_v0  ;;  %v497_v6 = vld [vmem:[#allocation2 + $0x9] sm:$0xff]  ;;  %v349_v35 = vmul.f32 %v4941_v10, %v310_v30  ;;  %v312_v36 = vld [vmem:[%s4883_s12 + $0x50] sm:$0xff]  ;;  %v385_v37 = vadd.f32 %v4946_v11, %v346_v27  ;;  %v386_v38 = vadd.f32 %v4946_v11, %v347_v28 }
  0x61   : > { %281 = vst.msk [vmem:[#allocation2 + $0x120] sm:$0x1] %vm269_vm2, %v4706_v0  ;;  %282 = vst.msk [vmem:[#allocation2 + $0x138] sm:$0x1] %vm269_vm2, %v4706_v0  ;;  %v528_v8 = vpack.c.bf16 %v497_v6, %v496_v5  ;;  %v387_v39 = vadd.f32 %v4946_v11, %v348_v29  ;;  %v350_v40 = vmul.f32 %v4941_v10, %v311_v31  ;;  %v313_v41 = vld [vmem:[%s4883_s12 + $0x58] sm:$0xff]  ;;  %v315_v43 = vld [vmem:[%s4883_s12 + $0x68] sm:$0xff] }
  0x62   : > { %283 = vst.msk [vmem:[#allocation2 + $0x150] sm:$0x1] %vm269_vm2, %v4706_v0  ;;  %284 = vst.msk [vmem:[#allocation2 + $0x168] sm:$0x1] %vm269_vm2, %v4706_v0  ;;  %v388_v44 = vadd.f32 %v4946_v11, %v349_v35  ;;  %v351_v45 = vmul.f32 %v4941_v10, %v312_v36  ;;  %v352_v46 = vmul.f32 %v4941_v10, %v313_v41  ;;  %v316_v48 = vld [vmem:[%s4883_s12 + $0x70] sm:$0xff]  ;;  %v317_v49 = vld [vmem:[%s4883_s12 + $0x78] sm:$0xff] }
  0x63   : > { %285 = vst.msk [vmem:[#allocation2 + $0x180] sm:$0x1] %vm269_vm2, %v4706_v0  ;;  %287 = vst.msk [vmem:[#allocation2 + $0x41] sm:$0x1] %vm269_vm2, %v4706_v0  ;;  %3908 = vmatprep.mubr.msk.bf16.mxu1 %vm259_vm0, %v528_v8  ;;  %v353_v47 = vmul.f32 %v4941_v10, %v314_v42  ;;  %v318_v50 = vld [vmem:[%s4883_s12 + $0x80] sm:$0xff]  ;;  %v389_v51 = vadd.f32 %v4946_v11, %v350_v40  ;;  %v354_v52 = vmul.f32 %v4941_v10, %v315_v43  ;;  %v319_v55 = vld [vmem:[%s4883_s12 + $0x88] sm:$0xff] }
  0x64   : > { %288 = vst.msk [vmem:[#allocation2 + $0x59] sm:$0x1] %vm269_vm2, %v4706_v0  ;;  %289 = vst.msk [vmem:[#allocation2 + $0x71] sm:$0x1] %vm269_vm2, %v4706_v0  ;;  %v355_v53 = vmul.f32 %v4941_v10, %v316_v48  ;;  %v356_v54 = vmul.f32 %v4941_v10, %v317_v49  ;;  %v390_v56 = vadd.f32 %v4946_v11, %v351_v45  ;;  %v321_v1 = vld [vmem:[%s4883_s12 + $0x98] sm:$0xff]  ;;  %v4559_v13 = vld [vmem:[#allocation6 + $0x8] sm:$0xff]  }
  0x65   : > { %290 = vst.msk [vmem:[#allocation2 + $0x89] sm:$0x1] %vm269_vm2, %v4706_v0  ;;  %291 = vst.msk [vmem:[#allocation2 + $0xa1] sm:$0x1] %vm269_vm2, %v4706_v0  ;;  %v391_v57 = vadd.f32 %v4946_v11, %v352_v46  ;;  %v392_v58 = vadd.f32 %v4946_v11, %v353_v47  ;;  %v357_v59 = vmul.f32 %v4941_v10, %v318_v50  ;;  %v324_v21 = vld [vmem:[%s4883_s12 + $0xb0] sm:$0xff]  ;;  %v325_v22 = vld [vmem:[%s4883_s12 + $0xb8] sm:$0xff] }
  0x66   : > { %292 = vst.msk [vmem:[#allocation2 + $0xb9] sm:$0x1] %vm269_vm2, %v4706_v0  ;;  %293 = vst.msk [vmem:[#allocation2 + $0xd1] sm:$0x1] %vm269_vm2, %v4706_v0  ;;  %v393_v60 = vadd.f32 %v4946_v11, %v354_v52  ;;  %v394_v61 = vadd.f32 %v4946_v11, %v355_v53  ;;  %v395_v62 = vadd.f32 %v4946_v11, %v356_v54  ;;  %v326_v23 = vld [vmem:[%s4883_s12 + $0xc0] sm:$0xff]  ;;  %v328_v47 = vld [vmem:[%s4883_s12 + $0xd0] sm:$0xff] }
  0x67   : > { %294 = vst.msk [vmem:[#allocation2 + $0xe9] sm:$0x1] %vm269_vm2, %v4706_v0  ;;  %295 = vst.msk [vmem:[#allocation2 + $0x101] sm:$0x1] %vm269_vm2, %v4706_v0  ;;  %v358_v63 = vmul.f32 %v4941_v10, %v319_v55  ;;  %v396_v6 = vadd.f32 %v4946_v11, %v357_v59  ;;  %v360_v8 = vmul.f32 %v4941_v10, %v321_v1  ;;  %v5066_v43 = vld [vmem:[#allocation6 + $0x60] sm:$0xff]   ;;  %v329_v49 = vld [vmem:[%s4883_s12 + $0xd8] sm:$0xff] }
  0x68   : > { %296 = vst.msk [vmem:[#allocation2 + $0x119] sm:$0x1] %vm269_vm2, %v4706_v0  ;;  %297 = vst.msk [vmem:[#allocation2 + $0x131] sm:$0x1] %vm269_vm2, %v4706_v0  ;;  %v363_v28 = vmul.f32 %v4941_v10, %v324_v21  ;;  %v364_v29 = vmul.f32 %v4941_v10, %v325_v22  ;;  %v367_v50 = vmul.f32 %v4941_v10, %v328_v47  ;;  %v331_v53 = vld [vmem:[%s4883_s12 + $0xe8] sm:$0xff]  ;;  %s3412_s28 = sshll.u32 %s5494_s29, 4  ;;  %s5597_s28 = int_to_ptr.vmem [resolvable:$true] %s3412_s28 }
  0x69   : > { %298 = vst.msk [vmem:[#allocation2 + $0x149] sm:$0x1] %vm269_vm2, %v4706_v0  ;;  %299 = vst.msk [vmem:[#allocation2 + $0x161] sm:$0x1] %vm269_vm2, %v4706_v0  ;;  %v397_v12 = vadd.f32 %v4946_v11, %v358_v63  ;;  %v399_v19 = vadd.f32 %v4946_v11, %v360_v8  ;;  %v368_v52 = vmul.f32 %v4941_v10, %v329_v49  ;;  %s3399_s22 = scalar_lea.sflag [#allocation5], %s4879_s23  ;;  %s4628_s11 = scalar_lea.vmem %s5597_s28, 2048 }
  0x6a   : > { %300 = vst.msk [vmem:[#allocation2 + $0x179] sm:$0x1] %vm269_vm2, %v4706_v0  ;;  %301 = vst.msk [vmem:[#allocation2 + $0x191] sm:$0x1] %vm269_vm2, %v4706_v0  ;;  %v320_v0 = vld [vmem:[%s4883_s12 + $0x90] sm:$0xff]  ;;  %p4629_p4 = scmp.ne.s32.totalorder %s5597_s28, %s4628_s11 }
  0x6b   : > { %412 = vst.msk [vmem:[#allocation2 + $0x19] sm:$0xff] %vm259_vm0, %v380_v16  ;;  %413 = vst.msk [vmem:[#allocation2 + $0x21] sm:$0xff] %vm259_vm0, %v381_v17  ;;  %v359_v7 = vmul.f32 %v4941_v10, %v320_v0  ;;  %v322_v16 = vld [vmem:[%s4883_s12 + $0xa0] sm:$0xff]  ;;  %v323_v17 = vld [vmem:[%s4883_s12 + $0xa8] sm:$0xff] }
  0x6c   : > { %414 = vst.msk [vmem:[#allocation2 + $0x31] sm:$0xff] %vm259_vm0, %v382_v32  ;;  %415 = vst.msk [vmem:[#allocation2 + $0x39] sm:$0xff] %vm259_vm0, %v383_v33  ;;  %v361_v20 = vmul.f32 %v4941_v10, %v322_v16  ;;  %v362_v27 = vmul.f32 %v4941_v10, %v323_v17  ;;  %v4558_v32 = vld [vmem:[#allocation6 + $0x58] sm:$0xff]   ;;  %p4630_p6 = pnand %p4629_p4, %p4831_p12 }
  0x6d   : > { %416 = vst.msk [vmem:[#allocation2 + $0x49] sm:$0xff] %vm259_vm0, %v384_v34  ;;  %417 = vst.msk [vmem:[#allocation2 + $0x51] sm:$0xff] %vm259_vm0, %v385_v37  ;;  %v398_v18 = vadd.f32 %v4946_v11, %v359_v7  ;;  %v365_v34 = vmul.f32 %v4941_v10, %v326_v23  ;;  %v402_v37 = vadd.f32 %v4946_v11, %v363_v28  ;;  %v333_v23 = vld [vmem:[%s4883_s12 + $0xf8] sm:$0xff] }
  0x6e   : > { %418 = vst.msk [vmem:[#allocation2 + $0x61] sm:$0xff] %vm259_vm0, %v386_v38  ;;  %419 = vst.msk [vmem:[#allocation2 + $0x69] sm:$0xff] %vm259_vm0, %v387_v39  ;;  %v400_v33 = vadd.f32 %v4946_v11, %v361_v20  ;;  %v401_v36 = vadd.f32 %v4946_v11, %v362_v27  ;;  %v372_v28 = vmul.f32 %v4941_v10, %v333_v23  ;;  %p4631_p8 = pneg %p4630_p6 }
  0x6f   : > { %420 = vst.msk [vmem:[#allocation2 + $0x79] sm:$0xff] %vm259_vm0, %v388_v44  ;;  %421 = vst.msk [vmem:[#allocation2 + $0x81] sm:$0xff] %vm259_vm0, %v389_v51  ;;  %v404_v38 = vadd.f32 %v4946_v11, %v365_v34  ;;  %v327_v44 = vld [vmem:[%s4883_s12 + $0xc8] sm:$0xff]  ;;  %v330_v51 = vld [vmem:[%s4883_s12 + $0xe0] sm:$0xff] }
  0x70   : > { %422 = vst.msk [vmem:[#allocation2 + $0x91] sm:$0xff] %vm259_vm0, %v390_v56  ;;  %423 = vst.msk [vmem:[#allocation2 + $0x99] sm:$0xff] %vm259_vm0, %v391_v57  ;;  %v366_v46 = vmul.f32 %v4941_v10, %v327_v44  ;;  %v369_v54 = vmul.f32 %v4941_v10, %v330_v51  ;;  %v406_v57 = vadd.f32 %v4946_v11, %v367_v50  ;;  %v5159_v44 = vld [vmem:[#allocation6 + $0x70] sm:$0xff]  }
  0x71   : > { %424 = vst.msk [vmem:[#allocation2 + $0xa9] sm:$0xff] %vm259_vm0, %v392_v58  ;;  %425 = vst.msk [vmem:[#allocation2 + $0xb1] sm:$0xff] %vm259_vm0, %v393_v60  ;;  %v370_v58 = vmul.f32 %v4941_v10, %v331_v53 }
  0x72   : > { %v498_v3 = vld [vmem:[#allocation2 + $0x19] sm:$0xff]  ;;  %v499_v5 = vld [vmem:[#allocation2 + $0x21] sm:$0xff]  ;;  %426 = vst.msk [vmem:[#allocation2 + $0xc1] sm:$0xff] %vm259_vm0, %v394_v61  ;;  %427 = vst.msk [vmem:[#allocation2 + $0xc9] sm:$0xff] %vm259_vm0, %v395_v62  ;;  %v405_v48 = vadd.f32 %v4946_v11, %v366_v46  ;;  %v407_v61 = vadd.f32 %v4946_v11, %v368_v52  ;;  %v408_v62 = vadd.f32 %v4946_v11, %v369_v54 }
  0x73   : > { %v529_v9 = vpack.c.bf16 %v499_v5, %v498_v3  ;;  %428 = vst.msk [vmem:[#allocation2 + $0xd9] sm:$0xff] %vm259_vm0, %v396_v6  ;;  %v1605_v24 = vld [vmem:[#allocation2 + $0x31] sm:$0xff]  ;;  %v1606_v25 = vld [vmem:[#allocation2 + $0x39] sm:$0xff]  ;;  %429 = vst.msk [vmem:[#allocation2 + $0xe1] sm:$0xff] %vm259_vm0, %v397_v12  ;;  %v409_v63 = vadd.f32 %v4946_v11, %v370_v58 }
  0x74   : > { %v502_v26 = vld [vmem:[#allocation2 + $0x49] sm:$0xff]  ;;  %v5044_v30 = vpack.c.bf16 %v1606_v25, %v1605_v24  ;;  %v503_v31 = vld [vmem:[#allocation2 + $0x51] sm:$0xff]  ;;  %430 = vst.msk [vmem:[#allocation2 + $0xf1] sm:$0xff] %vm259_vm0, %v398_v18  ;;  %431 = vst.msk [vmem:[#allocation2 + $0xf9] sm:$0xff] %vm259_vm0, %v399_v19 }
  0x75   : > { %3909 = vmatmul.mubr.msk.bf16.vlgmr.msra.gmra.mrb[0].mxu1 %vm259_vm0, %v529_v9  ;;  %4052 = vmatprep.mubr.msk.bf16.mxu0 %vm259_vm0, %v529_v9  ;;  %v5050_v35 = vpack.c.bf16 %v503_v31, %v502_v26  ;;  %432 = vst.msk [vmem:[#allocation2 + $0x109] sm:$0xff] %vm259_vm0, %v400_v33  ;;  %v1609_v39 = vld [vmem:[#allocation2 + $0x61] sm:$0xff]  ;;  %v1610_v40 = vld [vmem:[#allocation2 + $0x69] sm:$0xff]  ;;  %433 = vst.msk [vmem:[#allocation2 + $0x111] sm:$0xff] %vm259_vm0, %v401_v36 }
  0x76   : > { %3941 = vmatpush3.bf16.msra.mxu1 %v4950_v14  ;;  %4053 = vmatmul.mubr.msk.bf16.vlgmr.msra.gmra.mrb[0].mxu0 %vm259_vm0, %v5044_v30  ;;  %v403_v14 = vadd.f32 %v4946_v11, %v364_v29  ;;  %434 = vst.msk [vmem:[#allocation2 + $0x121] sm:$0xff] %vm259_vm0, %v402_v37  ;;  %v506_v41 = vld [vmem:[#allocation2 + $0x79] sm:$0xff]  ;;  %v507_v42 = vld [vmem:[#allocation2 + $0x81] sm:$0xff]  ;;  %436 = vst.msk [vmem:[#allocation2 + $0x139] sm:$0xff] %vm259_vm0, %v404_v38 }
  0x77   : > { %3942 = vmatprep.subr.bf16.mxu1 %v4559_v13  ;;  %3912 = vmatprep.mubr.msk.bf16.mxu1 %vm259_vm0, %v5044_v30  ;;  %v5075_v45 = vpack.c.bf16 %v507_v42, %v506_v41  ;;  %v1613_v55 = vld [vmem:[#allocation2 + $0x91] sm:$0xff]  ;;  %v1614_v56 = vld [vmem:[#allocation2 + $0x99] sm:$0xff]  ;;  %437 = vst.msk [vmem:[#allocation2 + $0x141] sm:$0xff] %vm259_vm0, %v405_v48  ;;  %438 = vst.msk [vmem:[#allocation2 + $0x151] sm:$0xff] %vm259_vm0, %v406_v57 }
  0x78   : > { %4085 = vmatpush3.bf16.msra.mxu0 %v4953_v15  ;;  %4056 = vmatprep.mubr.msk.bf16.mxu0 %vm259_vm0, %v5050_v35  ;;  %435 = vst.msk [vmem:[#allocation2 + $0x129] sm:$0xff] %vm259_vm0, %v403_v14  ;;  %v5070_v15 = vpack.c.bf16 %v1610_v40, %v1609_v39  ;;  %v510_v59 = vld [vmem:[#allocation2 + $0xa9] sm:$0xff]  ;;  %v511_v60 = vld [vmem:[#allocation2 + $0xb1] sm:$0xff]  ;;  %v5100_v0 = vpack.c.bf16 %v1614_v56, %v1613_v55  ;;  %439 = vst.msk [vmem:[#allocation2 + $0x159] sm:$0xff] %vm259_vm0, %v407_v61 }
  0x79   : > { %4086 = vmatprep.subr.bf16.mxu0 %v4558_v32  ;;  %440 = vst.msk [vmem:[#allocation2 + $0x169] sm:$0xff] %vm259_vm0, %v408_v62  ;;  %v5106_v1 = vpack.c.bf16 %v511_v60, %v510_v59  ;;  %441 = vst.msk [vmem:[#allocation2 + $0x171] sm:$0xff] %vm259_vm0, %v409_v63  ;;  %v5109_v3 = vld [vmem:[#allocation6 + $0x20] sm:$0xff]   ;;  %v1617_v5 = vld [vmem:[#allocation2 + $0xc1] sm:$0xff] }
  0x7a   : > { %3943 = vmatpush3.bf16.msra.mxu1 %v4559_v13  ;;  %v1618_v6 = vld [vmem:[#allocation2 + $0xc9] sm:$0xff]  ;;  %v1909_v7 = vld [vmem:[#allocation2 + $0x1a] sm:$0xff]  ;;  %v1911_v21 = vld [vmem:[#allocation2 + $0x32] sm:$0xff] }
  0x7b   : > { %3976 = vmatprep.subr.bf16.mxu1 %v5109_v3  ;;  %v1910_v8 = vld [vmem:[#allocation2 + $0x22] sm:$0xff]  ;;  %v5118_v9 = vpack.c.bf16 %v1618_v6, %v1617_v5  ;;  %v514_v13 = vld [vmem:[#allocation2 + $0xd9] sm:$0xff]  ;;  %v516_v17 = vld [vmem:[#allocation2 + $0xf1] sm:$0xff] }
  0x7c   : > { %4087 = vmatpush3.bf16.msra.mxu0 %v4558_v32  ;;  %v5122_v12 = vpack.c.bf16 %v1910_v8, %v1909_v7  ;;  %v515_v16 = vld [vmem:[#allocation2 + $0xe1] sm:$0xff]  ;;  %v517_v18 = vld [vmem:[#allocation2 + $0xf9] sm:$0xff]  ;;  %v1913_v26 = vld [vmem:[#allocation2 + $0x4a] sm:$0xff]  ;;  %v411_v32 = vadd.f32 %v4946_v11, %v372_v28 }
  0x7d   : > { %3913 = vmatmul.mubr.msk.bf16.gmra.mrb[4].mxu1 %vm259_vm0, %v5050_v35  ;;  %4120 = vmatprep.subr.bf16.mxu0 %v5066_v43  ;;  %v332_v19 = vld [vmem:[%s4883_s12 + $0xf0] sm:$0xff]  ;;  %v5129_v20 = vpack.c.bf16 %v515_v16, %v514_v13  ;;  %v5135_v25 = vpack.c.bf16 %v517_v18, %v516_v17  ;;  %v1914_v27 = vld [vmem:[#allocation2 + $0x52] sm:$0xff]  ;;  %v518_v34 = vld [vmem:[#allocation2 + $0x109] sm:$0xff]  ;;  %s4707_s12 = smov [#allocation8]  }
  0x7e   : > { %3916 = vmatprep.mubr.msk.bf16.mxu1 %vm259_vm0, %v5070_v15  ;;  %4057 = vmatmul.mubr.msk.bf16.gmra.mrb[4].mxu0 %vm259_vm0, %v5070_v15  ;;  %v1912_v22 = vld [vmem:[#allocation2 + $0x3a] sm:$0xff]  ;;  %v371_v24 = vmul.f32 %v4941_v10, %v332_v19  ;;  %v5144_v33 = vpack.c.bf16 %v1914_v27, %v1913_v26  ;;  %v519_v36 = vld [vmem:[#allocation2 + $0x111] sm:$0xff]  ;;  %443 = vst.msk [vmem:[#allocation2 + $0x189] sm:$0xff] %vm259_vm0, %v411_v32  ;;  %v1918_v41 = vld [vmem:[#allocation2 + $0x82] sm:$0xff]  ;;  %s4632_s24 = sshll.u32 %s4707_s12, 4  ;;  %s4633_s24 = int_to_ptr.vmem [resolvable:$false] %s4632_s24 }
  0x7f   : > { %4060 = vmatprep.mubr.msk.bf16.mxu0 %vm259_vm0, %v5075_v45  ;;  %v5139_v31 = vpack.c.bf16 %v1912_v22, %v1911_v21  ;;  %v4562_v37 = vld [vmem:[#allocation6 + $0x68] sm:$0xff]   ;;  %v520_v10 = vld [vmem:[#allocation2 + $0x121] sm:$0xff]  ;;  %v521_v14 = vld [vmem:[#allocation2 + $0x129] sm:$0xff]  ;;  %v5153_v40 = vpack.c.bf16 %v519_v36, %v518_v34  ;;  %s4634_s26 = scalar_lea.vmem %s4633_s24, 4096  ;;  %p4635_p10 = scmp.lt.s32.totalorder %s5597_s28, %s4633_s24 }
  0x80   : > { %v410_v29 = vadd.f32 %v4946_v11, %v371_v24  ;;  %v1915_v11 = vld [vmem:[#allocation2 + $0x62] sm:$0xff]  ;;  %v1916_v38 = vld [vmem:[#allocation2 + $0x6a] sm:$0xff]  ;;  %v1917_v39 = vld [vmem:[#allocation2 + $0x7a] sm:$0xff]  ;;  %v5157_v42 = vpack.c.bf16 %v521_v14, %v520_v10  ;;  %p4636_p13 = scmp.lt.s32.totalorder %s4634_s26, %s4628_s11 }
  0x81   : > { %v5161_v46 = vpack.c.bf16 %v1916_v38, %v1915_v11  ;;  %v522_v47 = vld [vmem:[#allocation2 + $0x139] sm:$0xff]  ;;  %v523_v48 = vld [vmem:[#allocation2 + $0x141] sm:$0xff]  ;;  %v5165_v49 = vpack.c.bf16 %v1918_v41, %v1917_v39  ;;  %v1921_v55 = vld [vmem:[#allocation2 + $0xaa] sm:$0xff] }
  0x82   : > { %442 = vst.msk [vmem:[#allocation2 + $0x181] sm:$0xff] %vm259_vm0, %v410_v29  ;;  %v525_v50 = vld [vmem:[#allocation2 + $0x159] sm:$0xff]  ;;  %v5172_v51 = vpack.c.bf16 %v523_v48, %v522_v47  ;;  %v526_v59 = vld [vmem:[#allocation2 + $0x169] sm:$0xff]  ;;  %v527_v60 = vld [vmem:[#allocation2 + $0x171] sm:$0xff]  ;;  %p4637_p3 = por %p4636_p13, %p4635_p10 }
  0x83   : > { %v1919_v52 = vld [vmem:[#allocation2 + $0x92] sm:$0xff]  ;;  %v1920_v53 = vld [vmem:[#allocation2 + $0x9a] sm:$0xff]  ;;  %v445_v62 = vld [vmem:[#allocation2 + $0x8] sm:$0xff]  ;;  %v5188_v63 = vpack.c.bf16 %v527_v60, %v526_v59 }
  0x84   : > { %v1922_v56 = vld [vmem:[#allocation2 + $0xb2] sm:$0xff]  ;;  %v5178_v57 = vpack.c.bf16 %v1920_v53, %v1919_v52  ;;  %v444_v61 = vld [vmem:[#allocation2] sm:$0xff]  ;;  %v1924_v6 = vld [vmem:[#allocation2 + $0xca] sm:$0xff]  ;;  %p4638_p7 = pnand %p4637_p3, %p4631_p8 }
  0x85   : > { %3917 = vmatmul.mubr.msk.bf16.gmra.mrb[8].mxu1 %vm259_vm0, %v5075_v45  ;;  %v5182_v58 = vpack.c.bf16 %v1922_v56, %v1921_v55  ;;  %v1923_v5 = vld [vmem:[#allocation2 + $0xc2] sm:$0xff]  ;;  %v476_v7 = vpack.c.bf16 %v445_v62, %v444_v61  ;;  %v1925_v8 = vld [vmem:[#allocation2 + $0xda] sm:$0xff]  ;;  %v448_v21 = vld [vmem:[#allocation2 + $0x30] sm:$0xff] }
  0x86   : > { %3920 = vmatprep.mubr.msk.bf16.mxu1 %vm259_vm0, %v5100_v0  ;;  %4061 = vmatmul.mubr.msk.bf16.gmra.mrb[8].mxu0 %vm259_vm0, %v5100_v0  ;;  %v1926_v13 = vld [vmem:[#allocation2 + $0xe2] sm:$0xff]  ;;  %v5192_v16 = vpack.c.bf16 %v1924_v6, %v1923_v5  ;;  %v446_v18 = vld [vmem:[#allocation2 + $0x18] sm:$0xff]  ;;  %v1929_v28 = vld [vmem:[#allocation2 + $0x10a] sm:$0xff] }
  0x87   : > { %4064 = vmatprep.mubr.msk.bf16.mxu0 %vm259_vm0, %v5106_v1  ;;  %v5196_v17 = vpack.c.bf16 %v1926_v13, %v1925_v8  ;;  %v447_v19 = vld [vmem:[#allocation2 + $0x20] sm:$0xff]  ;;  %v449_v22 = vld [vmem:[#allocation2 + $0x38] sm:$0xff]  ;;  %v451_v10 = vld [vmem:[#allocation2 + $0x50] sm:$0xff] }
  0x88   : > { %v5201_v23 = vpack.c.bf16 %v447_v19, %v446_v18  ;;  %v1927_v24 = vld [vmem:[#allocation2 + $0xf2] sm:$0xff]  ;;  %v1928_v26 = vld [vmem:[#allocation2 + $0xfa] sm:$0xff]  ;;  %v5205_v27 = vpack.c.bf16 %v449_v22, %v448_v21  ;;  %v453_v11 = vld [vmem:[#allocation2 + $0x68] sm:$0xff] }
  0x89   : > { %v1930_v29 = vld [vmem:[#allocation2 + $0x112] sm:$0xff]  ;;  %v5207_v34 = vpack.c.bf16 %v1928_v26, %v1927_v24  ;;  %v452_v14 = vld [vmem:[#allocation2 + $0x60] sm:$0xff]  ;;  %v1937_v6 = vld [vmem:[#allocation2 + $0x16a] sm:$0xff] }
  0x8a   : > { %v4563_v32 = vld [vmem:[#allocation6 + $0x28] sm:$0xff]   ;;  %v5211_v36 = vpack.c.bf16 %v1930_v29, %v1929_v28  ;;  %v5216_v38 = vld [vmem:[#allocation6 + $0x30] sm:$0xff]   ;;  %v5224_v47 = vpack.c.bf16 %v453_v11, %v452_v14  ;;  %v456_v56 = vld [vmem:[#allocation2 + $0x90] sm:$0xff] }
  0x8b   : > { %v1931_v41 = vld [vmem:[#allocation2 + $0x122] sm:$0xff]  ;;  %v1933_v48 = vld [vmem:[#allocation2 + $0x13a] sm:$0xff]  ;;  %v1935_v61 = vld [vmem:[#allocation2 + $0x152] sm:$0xff] }
  0x8c   : > { %v454_v53 = vld [vmem:[#allocation2 + $0x78] sm:$0xff]  ;;  %v455_v55 = vld [vmem:[#allocation2 + $0x80] sm:$0xff]  ;;  %v458_v18 = vld [vmem:[#allocation2 + $0xa8] sm:$0xff] }
  0x8d   : > { %3921 = vmatmul.mubr.msk.bf16.gmra.mrb[12].mxu1 %vm259_vm0, %v5106_v1  ;;  %v457_v59 = vld [vmem:[#allocation2 + $0x98] sm:$0xff]  ;;  %v5237_v60 = vpack.c.bf16 %v455_v55, %v454_v53  ;;  %v459_v19 = vld [vmem:[#allocation2 + $0xb0] sm:$0xff]  ;;  %v460_v21 = vld [vmem:[#allocation2 + $0xc0] sm:$0xff] }
  0x8e   : > { %3924 = vmatprep.mubr.msk.bf16.mxu1 %vm259_vm0, %v5118_v9  ;;  %4065 = vmatmul.mubr.msk.bf16.gmra.mrb[12].mxu0 %vm259_vm0, %v5118_v9  ;;  %v1936_v62 = vld [vmem:[#allocation2 + $0x15a] sm:$0xff]  ;;  %v5241_v5 = vpack.c.bf16 %v457_v59, %v456_v56  ;;  %v461_v22 = vld [vmem:[#allocation2 + $0xc8] sm:$0xff]  ;;  %v5253_v24 = vpack.c.bf16 %v459_v19, %v458_v18  ;;  %v464_v14 = vld [vmem:[#allocation2 + $0xf0] sm:$0xff] }
  0x8f   : > { %4088 = vmatprep.mubr.msk.bf16.mxu0 %vm259_vm0, %v5122_v12  ;;  %v5243_v8 = vpack.c.bf16 %v1936_v62, %v1935_v61  ;;  %v1939_v26 = vld [vmem:[#allocation2 + $0x182] sm:$0xff]  ;;  %v1940_v28 = vld [vmem:[#allocation2 + $0x18a] sm:$0xff]  ;;  %v5257_v29 = vpack.c.bf16 %v461_v22, %v460_v21  ;;  %v465_v11 = vld [vmem:[#allocation2 + $0xf8] sm:$0xff] }
  0x90   : > { %v4566_v53 = vld [vmem:[#allocation6 + $0x78] sm:$0xff]   ;;  %v468_v55 = vld [vmem:[#allocation2 + $0x120] sm:$0xff]  ;;  %v4568_v62 = vld [vmem:[#allocation6 + $0x80] sm:$0xff]  }
  0x91   : > { %v469_v56 = vld [vmem:[#allocation2 + $0x128] sm:$0xff]  ;;  %v473_v18 = vld [vmem:[#allocation2 + $0x158] sm:$0xff] }
  0x92   : > { %v5284_v61 = vpack.c.bf16 %v469_v56, %v468_v55  ;;  %v474_v22 = vld [vmem:[#allocation2 + $0x168] sm:$0xff]  ;;  %v4569_v56 = vld [vmem:[#allocation6 + $0x88] sm:$0xff]  }
  0x95   : > { %3925 = vmatmul.mubr.msk.bf16.gmra.mrb[16].mxu1 %vm259_vm0, %v5129_v20 }
  0x96   : > { %3928 = vmatprep.mubr.msk.bf16.mxu1 %vm259_vm0, %v5135_v25  ;;  %4089 = vmatmul.mubr.msk.bf16.vlgmr.msra.gmra.mrb[0].mxu0 %vm259_vm0, %v5139_v31 }
  0x97   : > { %4121 = vmatpush3.bf16.msra.mxu0 %v5066_v43  ;;  %4092 = vmatprep.mubr.msk.bf16.mxu0 %vm259_vm0, %v5144_v33  ;;  %v524_v43 = vld [vmem:[#allocation2 + $0x151] sm:$0xff] }
  0x98   : > { %4122 = vmatprep.subr.bf16.mxu0 %v4562_v37  ;;  %v5176_v54 = vpack.c.bf16 %v525_v50, %v524_v43  ;;  %v1934_v43 = vld [vmem:[#allocation2 + $0x142] sm:$0xff] }
  0x99   : > { %v5231_v52 = vpack.c.bf16 %v1934_v43, %v1933_v48  ;;  %v466_v48 = vld [vmem:[#allocation2 + $0x108] sm:$0xff]  ;;  %v467_v43 = vld [vmem:[#allocation2 + $0x110] sm:$0xff] }
  0x9a   : > { %v5280_v59 = vpack.c.bf16 %v467_v43, %v466_v48  ;;  %v2246_v43 = vld [vmem:[#allocation2 + $0x198] sm:$0xff] }
  0x9b   : > { %4123 = vmatpush3.bf16.msra.mxu0 %v4562_v37  ;;  %v450_v37 = vld [vmem:[#allocation2 + $0x48] sm:$0xff] }
  0x9c   : > { %4156 = vmatprep.subr.bf16.mxu0 %v5159_v44  ;;  %v5220_v39 = vpack.c.bf16 %v451_v10, %v450_v37  ;;  %v462_v37 = vld [vmem:[#allocation2 + $0xd8] sm:$0xff]  ;;  %v463_v10 = vld [vmem:[#allocation2 + $0xe0] sm:$0xff] }
  0x9d   : > { %3929 = vmatmul.mubr.msk.bf16.gmra.mrb[20].mxu1 %vm259_vm0, %v5153_v40 }
  0x9e   : > { %3932 = vmatprep.mubr.msk.bf16.mxu1 %vm259_vm0, %v5157_v42  ;;  %4093 = vmatmul.mubr.msk.bf16.gmra.mrb[4].mxu0 %vm259_vm0, %v5161_v46 }
  0x9f   : > { %4096 = vmatprep.mubr.msk.bf16.mxu0 %vm259_vm0, %v5165_v49 }
  0xa5   : > { %3933 = vmatmul.mubr.msk.bf16.gmra.mrb[24].mxu1 %vm259_vm0, %v5172_v51 }
  0xa6   : > { %3936 = vmatprep.mubr.msk.bf16.mxu1 %vm259_vm0, %v5176_v54  ;;  %4097 = vmatmul.mubr.msk.bf16.gmra.mrb[8].mxu0 %vm259_vm0, %v5178_v57 }
  0xa7   : > { %4100 = vmatprep.mubr.msk.bf16.mxu0 %vm259_vm0, %v5182_v58 }
  0xad   : > { %3937 = vmatmul.mubr.msk.bf16.gmra.mrb[28].mxu1 %vm259_vm0, %v5188_v63 }
  0xae   : > { %3944 = vmatprep.mubr.msk.bf16.mxu1 %vm259_vm0, %v476_v7  ;;  %4101 = vmatmul.mubr.msk.bf16.gmra.mrb[12].mxu0 %vm259_vm0, %v5192_v16  ;;  %v1938_v7 = vld [vmem:[#allocation2 + $0x172] sm:$0xff] }
  0xaf   : > { %4104 = vmatprep.mubr.msk.bf16.mxu0 %vm259_vm0, %v5196_v17  ;;  %v5247_v13 = vpack.c.bf16 %v1938_v7, %v1937_v6  ;;  %v470_v6 = vld [vmem:[#allocation2 + $0x138] sm:$0xff]  ;;  %v471_v7 = vld [vmem:[#allocation2 + $0x140] sm:$0xff] }
  0xb0   : > { %v5292_v19 = vpack.c.bf16 %v471_v7, %v470_v6 }
  0xb5   : > { %3945 = vmatmul.mubr.msk.bf16.vlgmr.msra.gmra.mrb[0].mxu1 %vm259_vm0, %v5201_v23 }
  0xb6   : > { %3977 = vmatpush3.bf16.msra.mxu1 %v5109_v3  ;;  %3948 = vmatprep.mubr.msk.bf16.mxu1 %vm259_vm0, %v5205_v27  ;;  %v1932_v3 = vld [vmem:[#allocation2 + $0x12a] sm:$0xff] }
  0xb7   : > { %3978 = vmatprep.subr.bf16.mxu1 %v4563_v32  ;;  %4105 = vmatmul.mubr.msk.bf16.gmra.mrb[16].mxu0 %vm259_vm0, %v5207_v34  ;;  %v5227_v50 = vpack.c.bf16 %v1932_v3, %v1931_v41  ;;  %v5267_v41 = vpack.c.bf16 %v463_v10, %v462_v37  ;;  %v5271_v3 = vpack.c.bf16 %v465_v11, %v464_v14  ;;  %v992_v37 = vld [vmem:[#allocation2 + $0xa] sm:$0xff] }
  0xb8   : > { %4108 = vmatprep.mubr.msk.bf16.mxu0 %vm259_vm0, %v5211_v36  ;;  %v4567_v11 = vld [vmem:[#allocation6 + $0x38] sm:$0xff]  }
  0xba   : > { %3979 = vmatpush3.bf16.msra.mxu1 %v4563_v32  ;;  %v5259_v32 = vpack.c.bf16 %v1940_v28, %v1939_v26  ;;  %v475_v26 = vld [vmem:[#allocation2 + $0x170] sm:$0xff]  ;;  %v991_v28 = vld [vmem:[#allocation2 + $0x2] sm:$0xff] }
  0xbb   : > { %4012 = vmatprep.subr.bf16.mxu1 %v5216_v38  ;;  %v5304_v10 = vpack.c.bf16 %v475_v26, %v474_v22  ;;  %v1023_v14 = vpack.c.bf16 %v992_v37, %v991_v28 }
  0xbd   : > { %3949 = vmatmul.mubr.msk.bf16.gmra.mrb[4].mxu1 %vm259_vm0, %v5220_v39 }
  0xbe   : > { %3952 = vmatprep.mubr.msk.bf16.mxu1 %vm259_vm0, %v5224_v47 }
  0xbf   : > { %4109 = vmatmul.mubr.msk.bf16.gmra.mrb[20].mxu0 %vm259_vm0, %v5227_v50 }
  0xc0   : > { %4112 = vmatprep.mubr.msk.bf16.mxu0 %vm259_vm0, %v5231_v52 }
  0xc5   : > { %3953 = vmatmul.mubr.msk.bf16.gmra.mrb[8].mxu1 %vm259_vm0, %v5237_v60 }
  0xc6   : > { %3956 = vmatprep.mubr.msk.bf16.mxu1 %vm259_vm0, %v5241_v5 }
  0xc7   : > { %4113 = vmatmul.mubr.msk.bf16.gmra.mrb[24].mxu0 %vm259_vm0, %v5243_v8 }
  0xc8   : > { %4116 = vmatprep.mubr.msk.bf16.mxu0 %vm259_vm0, %v5247_v13 }
  0xcd   : > { %3957 = vmatmul.mubr.msk.bf16.gmra.mrb[12].mxu1 %vm259_vm0, %v5253_v24 }
  0xce   : > { %3960 = vmatprep.mubr.msk.bf16.mxu1 %vm259_vm0, %v5257_v29 }
  0xcf   : > { %4117 = vmatmul.mubr.msk.bf16.gmra.mrb[28].mxu0 %vm259_vm0, %v5259_v32 }
  0xd0   : > { %4124 = vmatprep.mubr.msk.bf16.mxu0 %vm259_vm0, %v5205_v27 }
  0xd5   : > { %3961 = vmatmul.mubr.msk.bf16.gmra.mrb[16].mxu1 %vm259_vm0, %v5267_v41 }
  0xd6   : > { %3964 = vmatprep.mubr.msk.bf16.mxu1 %vm259_vm0, %v5271_v3 }
  0xd7   : > { %4125 = vmatmul.mubr.msk.bf16.vlgmr.msra.gmra.mrb[0].mxu0 %vm259_vm0, %v5220_v39 }
  0xd8   : > { %4157 = vmatpush3.bf16.msra.mxu0 %v5159_v44  ;;  %4128 = vmatprep.mubr.msk.bf16.mxu0 %vm259_vm0, %v5224_v47  ;;  %v472_v44 = vld [vmem:[#allocation2 + $0x150] sm:$0xff] }
  0xd9   : > { %4158 = vmatprep.subr.bf16.mxu0 %v4566_v53  ;;  %v5296_v21 = vpack.c.bf16 %v473_v18, %v472_v44 }
  0xdc   : > { %4159 = vmatpush3.bf16.msra.mxu0 %v4566_v53  ;;  %v2247_v53 = vld [vmem:[#allocation2 + $0x1a0] sm:$0xff] }
  0xdd   : > { %3965 = vmatmul.mubr.msk.bf16.gmra.mrb[20].mxu1 %vm259_vm0, %v5280_v59  ;;  %4192 = vmatprep.subr.bf16.mxu0 %v4568_v62  ;;  %v2263_v55 = vpack.c.bf16 %v2247_v53, %v2246_v43 }
  0xde   : > { %3968 = vmatprep.mubr.msk.bf16.mxu1 %vm259_vm0, %v5284_v61 }
  0xdf   : > { %4129 = vmatmul.mubr.msk.bf16.gmra.mrb[4].mxu0 %vm259_vm0, %v5237_v60 }
  0xe0   : > { %4132 = vmatprep.mubr.msk.bf16.mxu0 %vm259_vm0, %v5241_v5 }
  0xe5   : > { %3969 = vmatmul.mubr.msk.bf16.gmra.mrb[24].mxu1 %vm259_vm0, %v5292_v19 }
  0xe6   : > { %3972 = vmatprep.mubr.msk.bf16.mxu1 %vm259_vm0, %v5296_v21 }
  0xe7   : > { %4133 = vmatmul.mubr.msk.bf16.gmra.mrb[8].mxu0 %vm259_vm0, %v5253_v24 }
  0xe8   : > { %4136 = vmatprep.mubr.msk.bf16.mxu0 %vm259_vm0, %v5257_v29 }
  0xed   : > { %3973 = vmatmul.mubr.msk.bf16.gmra.mrb[28].mxu1 %vm259_vm0, %v5304_v10 }
  0xee   : > { %3980 = vmatprep.mubr.msk.bf16.mxu1 %vm259_vm0, %v1023_v14 }
  0xef   : > { %4137 = vmatmul.mubr.msk.bf16.gmra.mrb[12].mxu0 %vm259_vm0, %v5267_v41 }
  0xf0   : > { %4140 = vmatprep.mubr.msk.bf16.mxu0 %vm259_vm0, %v5271_v3 }
  0xf5   : > { %3981 = vmatmul.mubr.msk.bf16.vlgmr.msra.gmra.mrb[0].mxu1 %vm259_vm0, %v5122_v12  ;;  %v2244_v12 = vld [vmem:[#allocation2 + $0x180] sm:$0xff] }
  0xf6   : > { %4013 = vmatpush3.bf16.msra.mxu1 %v5216_v38  ;;  %3984 = vmatprep.mubr.msk.bf16.mxu1 %vm259_vm0, %v5139_v31  ;;  %v2245_v38 = vld [vmem:[#allocation2 + $0x188] sm:$0xff] }
  0xf7   : > { %4014 = vmatprep.subr.bf16.mxu1 %v4567_v11  ;;  %4141 = vmatmul.mubr.msk.bf16.gmra.mrb[16].mxu0 %vm259_vm0, %v5280_v59  ;;  %v5335_v48 = vpack.c.bf16 %v2245_v38, %v2244_v12 }
  0xf8   : > { %4144 = vmatprep.mubr.msk.bf16.mxu0 %vm259_vm0, %v5284_v61 }
  0xfa   : > { %4015 = vmatpush3.bf16.msra.mxu1 %v4567_v11 }
  0xfb   : > { %4228 = vmatprep.subr.bf16.mxu1 %v4929_v2 }
  0xfd   : > { %3985 = vmatmul.mubr.msk.bf16.gmra.mrb[4].mxu1 %vm259_vm0, %v5144_v33 }
  0xfe   : > { %3988 = vmatprep.mubr.msk.bf16.mxu1 %vm259_vm0, %v5161_v46 }
  0xff   : > { %4145 = vmatmul.mubr.msk.bf16.gmra.mrb[20].mxu0 %vm259_vm0, %v5292_v19 }
 0x100   : > { %4148 = vmatprep.mubr.msk.bf16.mxu0 %vm259_vm0, %v5296_v21 }
 0x105   : > { %3989 = vmatmul.mubr.msk.bf16.gmra.mrb[8].mxu1 %vm259_vm0, %v5165_v49 }
 0x106   : > { %3992 = vmatprep.mubr.msk.bf16.mxu1 %vm259_vm0, %v5178_v57 }
 0x107   : > { %4149 = vmatmul.mubr.msk.bf16.gmra.mrb[24].mxu0 %vm259_vm0, %v5304_v10 }
 0x108   : > { %4152 = vmatprep.mubr.msk.bf16.mxu0 %vm259_vm0, %v5335_v48 }
 0x10d   : > { %3993 = vmatmul.mubr.msk.bf16.gmra.mrb[12].mxu1 %vm259_vm0, %v5182_v58 }
 0x10e   : > { %3996 = vmatprep.mubr.msk.bf16.mxu1 %vm259_vm0, %v5192_v16 }
 0x10f   : > { %4153 = vmatmul.mubr.msk.bf16.gmra.mrb[28].mxu0 %vm259_vm0, %v2263_v55 }
 0x110   : > { %4160 = vmatprep.mubr.msk.bf16.mxu0 %vm259_vm0, %v5044_v30  ;;  %v2551_v30 = vld [vmem:[#allocation2 + $0x189] sm:$0xff] }
 0x115   : > { %3997 = vmatmul.mubr.msk.bf16.gmra.mrb[16].mxu1 %vm259_vm0, %v5196_v17 }
 0x116   : > { %4000 = vmatprep.mubr.msk.bf16.mxu1 %vm259_vm0, %v5207_v34 }
 0x117   : > { %4161 = vmatmul.mubr.msk.bf16.vlgmr.msra.gmra.mrb[0].mxu0 %vm259_vm0, %v5050_v35 }
 0x118   : > { %4193 = vmatpush3.bf16.msra.mxu0 %v4568_v62  ;;  %4164 = vmatprep.mubr.msk.bf16.mxu0 %vm259_vm0, %v5070_v15  ;;  %v2553_v15 = vld [vmem:[#allocation2 + $0x1a1] sm:$0xff] }
 0x119   : > { %4194 = vmatprep.subr.bf16.mxu0 %v4569_v56 }
 0x11c   : > { %4195 = vmatpush3.bf16.msra.mxu0 %v4569_v56 }
 0x11d   : > { %4001 = vmatmul.mubr.msk.bf16.gmra.mrb[20].mxu1 %vm259_vm0, %v5211_v36 }
 0x11e   : > { %4004 = vmatprep.mubr.msk.bf16.mxu1 %vm259_vm0, %v5227_v50 }
 0x11f   : > { %4165 = vmatmul.mubr.msk.bf16.gmra.mrb[4].mxu0 %vm259_vm0, %v5075_v45 }
 0x120   : > { %4168 = vmatprep.mubr.msk.bf16.mxu0 %vm259_vm0, %v5100_v0  ;;  %v1619_v0 = vld [vmem:[#allocation2 + $0xd9] sm:$0xff] }
 0x125   : > { %4005 = vmatmul.mubr.msk.bf16.gmra.mrb[24].mxu1 %vm259_vm0, %v5231_v52 }
 0x126   : > { %4008 = vmatprep.mubr.msk.bf16.mxu1 %vm259_vm0, %v5243_v8 }
 0x127   : > { %4169 = vmatmul.mubr.msk.bf16.gmra.mrb[8].mxu0 %vm259_vm0, %v5106_v1  ;;  %v1620_v1 = vld [vmem:[#allocation2 + $0xe1] sm:$0xff] }
 0x128   : > { %4172 = vmatprep.mubr.msk.bf16.mxu0 %vm259_vm0, %v5118_v9  ;;  %v1643_v9 = vpack.c.bf16 %v1620_v1, %v1619_v0 }
 0x12d   : > { %4009 = vmatmul.mubr.msk.bf16.gmra.mrb[28].mxu1 %vm259_vm0, %v5247_v13 }
 0x12e   : > { %4016 = vmatprep.mubr.msk.bf16.mxu1 %vm259_vm0, %v5201_v23  ;;  %v2859_v23 = vld [vmem:[#allocation2 + $0x1a2] sm:$0xff] }
 0x12f   : > { %4173 = vmatmul.mubr.msk.bf16.gmra.mrb[12].mxu0 %vm259_vm0, %v5129_v20  ;;  %v1621_v20 = vld [vmem:[#allocation2 + $0xf1] sm:$0xff] }
 0x130   : > { %4176 = vmatprep.mubr.msk.bf16.mxu0 %vm259_vm0, %v5135_v25  ;;  %v1622_v25 = vld [vmem:[#allocation2 + $0xf9] sm:$0xff] }
 0x135   : > { %4017 = vmatmul.mubr.msk.bf16.vlgmr.msra.gmra.mrb[0].mxu1 %vm259_vm0, %v5205_v27 }
 0x136   : > { %4230 = vmatpush3.bf16.msra.mxu1 %v4929_v2  ;;  %4020 = vmatprep.mubr.msk.bf16.mxu1 %vm259_vm0, %v5220_v39  ;;  %v2550_v2 = vld [vmem:[#allocation2 + $0x181] sm:$0xff] }
 0x137   : > { %4229 = vmatprep.subr.bf16.mxu1 %v4932_v4  ;;  %4177 = vmatmul.mubr.msk.bf16.gmra.mrb[16].mxu0 %vm259_vm0, %v5153_v40  ;;  %v2568_v35 = vpack.c.bf16 %v2551_v30, %v2550_v2  ;;  %v1644_v40 = vpack.c.bf16 %v1622_v25, %v1621_v20 }
 0x138   : > { %4180 = vmatprep.mubr.msk.bf16.mxu0 %vm259_vm0, %v5157_v42 }
 0x13a   : > { %4231 = vmatpush3.bf16.msra.mxu1 %v4932_v4  ;;  %v2552_v4 = vld [vmem:[#allocation2 + $0x199] sm:$0xff] }
 0x13b   : > { %v2569_v45 = vpack.c.bf16 %v2553_v15, %v2552_v4 }
 0x13d   : > { %4021 = vmatmul.mubr.msk.bf16.gmra.mrb[4].mxu1 %vm259_vm0, %v5224_v47 }
 0x13e   : > { %4024 = vmatprep.mubr.msk.bf16.mxu1 %vm259_vm0, %v5237_v60 }
 0x13f   : > { %4181 = vmatmul.mubr.msk.bf16.gmra.mrb[20].mxu0 %vm259_vm0, %v5172_v51  ;;  %v1627_v51 = vld [vmem:[#allocation2 + $0x139] sm:$0xff] }
 0x140   : > { %4184 = vmatprep.mubr.msk.bf16.mxu0 %vm259_vm0, %v5176_v54 }
 0x145   : > { %4025 = vmatmul.mubr.msk.bf16.gmra.mrb[8].mxu1 %vm259_vm0, %v5241_v5 }
 0x146   : > { %4028 = vmatprep.mubr.msk.bf16.mxu1 %vm259_vm0, %v5253_v24 }
 0x147   : > { %4185 = vmatmul.mubr.msk.bf16.gmra.mrb[24].mxu0 %vm259_vm0, %v5188_v63 }
 0x148   : > { %4188 = vmatprep.mubr.msk.bf16.mxu0 %vm259_vm0, %v2568_v35 }
 0x14d   : > { %4029 = vmatmul.mubr.msk.bf16.gmra.mrb[12].mxu1 %vm259_vm0, %v5257_v29 }
 0x14e   : > { %4032 = vmatprep.mubr.msk.bf16.mxu1 %vm259_vm0, %v5267_v41 }
 0x14f   : > { %4189 = vmatmul.mubr.msk.bf16.gmra.mrb[28].mxu0 %vm259_vm0, %v2569_v45 }
 0x150   : > { %4196 = vmatprep.mubr.msk.bf16.mxu0 %vm259_vm0, %v5139_v31  ;;  %v1623_v31 = vld [vmem:[#allocation2 + $0x109] sm:$0xff] }
 0x155   : > { %4033 = vmatmul.mubr.msk.bf16.gmra.mrb[16].mxu1 %vm259_vm0, %v5271_v3 }
 0x156   : > { %4036 = vmatprep.mubr.msk.bf16.mxu1 %vm259_vm0, %v5280_v59  ;;  %v5487_v59 = vld [vmem:[%s5651_s4] ss:$0 sm:$0xff] }
 0x157   : > { %4197 = vmatmul.mubr.msk.bf16.vlgmr.msra.gmra.mrb[0].mxu0 %vm259_vm0, %v5144_v33  ;;  %v1624_v33 = vld [vmem:[#allocation2 + $0x111] sm:$0xff] }
 0x158   : > { %4200 = vmatprep.mubr.msk.bf16.mxu0 %vm259_vm0, %v5161_v46  ;;  %v1645_v42 = vpack.c.bf16 %v1624_v33, %v1623_v31  ;;  %v1625_v46 = vld [vmem:[#allocation2 + $0x121] sm:$0xff] }
 0x15d   : > { %4037 = vmatmul.mubr.msk.bf16.gmra.mrb[20].mxu1 %vm259_vm0, %v5284_v61 }
 0x15e   : > { %4040 = vmatprep.mubr.msk.bf16.mxu1 %vm259_vm0, %v5292_v19 }
 0x15f   : > { %4201 = vmatmul.mubr.msk.bf16.gmra.mrb[4].mxu0 %vm259_vm0, %v5165_v49  ;;  %v1626_v49 = vld [vmem:[#allocation2 + $0x129] sm:$0xff] }
 0x160   : > { %4204 = vmatprep.mubr.msk.bf16.mxu0 %vm259_vm0, %v5178_v57  ;;  %v1628_v57 = vld [vmem:[#allocation2 + $0x141] sm:$0xff] }
 0x165   : > { %4041 = vmatmul.mubr.msk.bf16.gmra.mrb[24].mxu1 %vm259_vm0, %v5296_v21 }
 0x166   : > { %4044 = vmatprep.mubr.msk.bf16.mxu1 %vm259_vm0, %v5304_v10 }
 0x167   : > { %4205 = vmatmul.mubr.msk.bf16.gmra.mrb[8].mxu0 %vm259_vm0, %v5182_v58  ;;  %v1646_v58 = vpack.c.bf16 %v1626_v49, %v1625_v46 }
 0x168   : > { %4208 = vmatprep.mubr.msk.bf16.mxu0 %vm259_vm0, %v5192_v16  ;;  %v1647_v16 = vpack.c.bf16 %v1628_v57, %v1627_v51 }
 0x16d   : > { %4045 = vmatmul.mubr.msk.bf16.gmra.mrb[28].mxu1 %vm259_vm0, %v5335_v48 }
 0x16e   : > { %4068 = vmatprep.mubr.msk.bf16.mxu1 %vm259_vm0, %v1643_v9 }
 0x16f   : > { %4209 = vmatmul.mubr.msk.bf16.gmra.mrb[12].mxu0 %vm259_vm0, %v5196_v17  ;;  %v2858_v17 = vld [vmem:[#allocation2 + $0x19a] sm:$0xff] }
 0x170   : > { %4212 = vmatprep.mubr.msk.bf16.mxu0 %vm259_vm0, %v5207_v34  ;;  %v2875_v27 = vpack.c.bf16 %v2859_v23, %v2858_v17 }
 0x175   : > { %4069 = vmatmul.mubr.msk.bf16.vlgmr.msra.gmra.mrb[16].mxu1 %vm259_vm0, %v1644_v40 }
 0x176   : > { %4072 = vmatprep.mubr.msk.bf16.mxu1 %vm259_vm0, %v1645_v42 }
 0x177   : > { %4213 = vmatmul.mubr.msk.bf16.gmra.mrb[16].mxu0 %vm259_vm0, %v5211_v36 }
 0x178   : > { %4216 = vmatprep.mubr.msk.bf16.mxu0 %vm259_vm0, %v5227_v50 }
 0x17d   : > { %4073 = vmatmul.mubr.msk.bf16.gmra.mrb[20].mxu1 %vm259_vm0, %v1646_v58 }
 0x17e   : > { %4076 = vmatprep.mubr.msk.bf16.mxu1 %vm259_vm0, %v1647_v16 }
 0x17f   : > { %4217 = vmatmul.mubr.msk.bf16.gmra.mrb[20].mxu0 %vm259_vm0, %v5231_v52 }
 0x180   : > { %4220 = vmatprep.mubr.msk.bf16.mxu0 %vm259_vm0, %v5243_v8 }
 0x185   : > { %4077 = vmatmul.mubr.msk.bf16.gmra.mrb[24].mxu1 %vm259_vm0, %v5176_v54 }
 0x186   : > { %4080 = vmatprep.mubr.msk.bf16.mxu1 %vm259_vm0, %v5188_v63 }
 0x187   : > { %4221 = vmatmul.mubr.msk.bf16.gmra.mrb[24].mxu0 %vm259_vm0, %v5247_v13 }
 0x188   : > { %4224 = vmatprep.mubr.msk.bf16.mxu0 %vm259_vm0, %v5259_v32 }
 0x18d   : > { %4081 = vmatmul.mubr.msk.bf16.gmra.mrb[28].mxu1 %vm259_vm0, %v2568_v35 }
 0x18f   : > { %4225 = vmatmul.mubr.msk.bf16.gmra.mrb[28].mxu0 %vm259_vm0, %v2875_v27 }
 0x208   : > { %v4018_v34 = vpop.f32.mrb[0].mxu1 }
 0x209   : > { %v1444_v36 = vpop.f32.mrb[1].mxu1 }
 0x20a   : > { %v4019_v39 = vpop.f32.mrb[2].mxu1 }
 0x20b   : > { %v1447_v54 = vpop.f32.mrb[3].mxu1 }
 0x210   : > { %v4022_v47 = vpop.f32.mrb[4].mxu1 }
 0x211   : > { %v1460_v63 = vpop.f32.mrb[5].mxu1 }
 0x212   : > { %v4023_v50 = vpop.f32.mrb[6].mxu1 }
 0x213   : > { %v1463_v52 = vpop.f32.mrb[7].mxu1 }
 0x218   : > { %v5468_v60 = vpop.f32.mrb[8].mxu1 }
 0x219   : > { %v5470_v5 = vpop.f32.mrb[9].mxu1 }
 0x21a   : > { %v5472_v8 = vpop.f32.mrb[10].mxu1 }
 0x21b   : > { %v5474_v13 = vpop.f32.mrb[11].mxu1 }
 0x220   : > { %v5476_v24 = vpop.f32.mrb[12].mxu1 }
 0x221   : > { %v5478_v29 = vpop.f32.mrb[13].mxu1 }
 0x222   : > { %v5480_v32 = vpop.f32.mrb[14].mxu1 }
 0x223   : > { %v5482_v41 = vpop.f32.mrb[15].mxu1 }
 0x22a   : > { %v4198_v3 = vpop.f32.mrb[0].mxu0 }
 0x22b   : > { %v4232_v61 = vadd.f32 %v4198_v3, %v4018_v34  ;;  %v2975_v62 = vpop.f32.mrb[1].mxu0 }
 0x22c   : > { %v4233_v6 = vadd.f32 %v2975_v62, %v1444_v36  ;;  %v4199_v7 = vpop.f32.mrb[2].mxu0 }
 0x22d   : > { %vm3137_vm3 = vcmp.ge.f32.partialorder %v4232_v61, 0.0  ;;  %v3175_v44 = vmul.f32 %v4232_v61, %v5487_v59  ;;  %v4234_v18 = vadd.f32 %v4199_v7, %v4019_v39  ;;  %v2978_v19 = vpop.f32.mrb[3].mxu0 }
 0x22e   : > { %vm3135_vm4 = vcmp.ge.f32.partialorder %v4233_v6, 0.0  ;;  %v3173_v21 = vmul.f32 %v4233_v6, %v5487_v59  ;;  %v4235_v22 = vadd.f32 %v2978_v19, %v1447_v54 }
 0x22f   : > { %v3207_v26 = vsel %vm3137_vm3, %v4232_v61, %v3175_v44  ;;  %vm3138_vm6 = vcmp.ge.f32.partialorder %v4234_v18, 0.0  ;;  %v3176_v28 = vmul.f32 %v4234_v18, %v5487_v59 }
 0x230   : > { %v3711_v37 = vpack.c.bf16 %v3207_v26, %v3207_v26  ;;  %v3205_v10 = vsel %vm3135_vm4, %v4233_v6, %v3173_v21  ;;  %vm3136_vm7 = vcmp.ge.f32.partialorder %v4235_v22, 0.0  ;;  %v3174_v14 = vmul.f32 %v4235_v22, %v5487_v59 }
 0x231   : > { %v3709_v11 = vpack.c.bf16 %v3205_v10, %v3205_v10  ;;  %v3208_v12 = vsel %vm3138_vm6, %v4234_v18, %v3176_v28 }
 0x232   : > { %3368 = vst.msk [vmem:[%s5494_s29 + $0x8] sm:$0xf] %vm3365_vm5, %v3711_v37  ;;  %v3712_v38 = vpack.c.bf16 %v3208_v12, %v3208_v12  ;;  %v3206_v48 = vsel %vm3136_vm7, %v4235_v22, %v3174_v14  ;;  %v4202_v43 = vpop.f32.mrb[4].mxu0 }
 0x233   : > { %3366 = vst.msk [vmem:[%s5494_s29] sm:$0xf] %vm3365_vm5, %v3709_v11  ;;  %v3710_v53 = vpack.c.bf16 %v3206_v48, %v3206_v48  ;;  %v4236_v55 = vadd.f32 %v4202_v43, %v4022_v47  ;;  %v2991_v56 = vpop.f32.mrb[5].mxu0 }
 0x234   : > { %3369 = vst.msk [vmem:[%s5494_s29 + $0xc] sm:$0xf] %vm3365_vm5, %v3712_v38  ;;  %v4237_v2 = vadd.f32 %v2991_v56, %v1460_v63  ;;  %v4203_v30 = vpop.f32.mrb[6].mxu0 }
 0x235   : > { %3367 = vst.msk [vmem:[%s5494_s29 + $0x4] sm:$0xf] %vm3365_vm5, %v3710_v53  ;;  %vm3141_vm8 = vcmp.ge.f32.partialorder %v4236_v55, 0.0  ;;  %v3179_v35 = vmul.f32 %v4236_v55, %v5487_v59  ;;  %v4238_v4 = vadd.f32 %v4203_v30, %v4023_v50  ;;  %v2994_v15 = vpop.f32.mrb[7].mxu0 }
 0x236   : > { %vm3139_vm9 = vcmp.ge.f32.partialorder %v4237_v2, 0.0  ;;  %v3177_v45 = vmul.f32 %v4237_v2, %v5487_v59  ;;  %v4239_v0 = vadd.f32 %v2994_v15, %v1463_v52 }
 0x237   : > { %v3211_v1 = vsel %vm3141_vm8, %v4236_v55, %v3179_v35  ;;  %vm3142_vm10 = vcmp.ge.f32.partialorder %v4238_v4, 0.0  ;;  %v3180_v9 = vmul.f32 %v4238_v4, %v5487_v59 }
 0x238   : > { %v3715_v20 = vpack.c.bf16 %v3211_v1, %v3211_v1  ;;  %v3209_v25 = vsel %vm3139_vm9, %v4237_v2, %v3177_v45  ;;  %vm3140_vm11 = vcmp.ge.f32.partialorder %v4239_v0, 0.0  ;;  %v3178_v31 = vmul.f32 %v4239_v0, %v5487_v59 }
 0x239   : > { %v3713_v33 = vpack.c.bf16 %v3209_v25, %v3209_v25  ;;  %v3212_v40 = vsel %vm3142_vm10, %v4238_v4, %v3180_v9 }
 0x23a   : > { %3372 = vst.msk [vmem:[%s5494_s29 + $0x18] sm:$0xf] %vm3365_vm5, %v3715_v20  ;;  %v3716_v42 = vpack.c.bf16 %v3212_v40, %v3212_v40  ;;  %v3210_v46 = vsel %vm3140_vm11, %v4239_v0, %v3178_v31  ;;  %v4206_v49 = vpop.f32.mrb[8].mxu0 }
 0x23b   : > { %3370 = vst.msk [vmem:[%s5494_s29 + $0x10] sm:$0xf] %vm3365_vm5, %v3713_v33  ;;  %v3714_v51 = vpack.c.bf16 %v3210_v46, %v3210_v46  ;;  %v4240_v57 = vadd.f32 %v4206_v49, %v5468_v60  ;;  %v3007_v58 = vpop.f32.mrb[9].mxu0 }
 0x23c   : > { %3373 = vst.msk [vmem:[%s5494_s29 + $0x1c] sm:$0xf] %vm3365_vm5, %v3716_v42  ;;  %v4241_v16 = vadd.f32 %v3007_v58, %v5470_v5  ;;  %v4207_v17 = vpop.f32.mrb[10].mxu0 }
 0x23d   : > { %3371 = vst.msk [vmem:[%s5494_s29 + $0x14] sm:$0xf] %vm3365_vm5, %v3714_v51  ;;  %vm3145_vm12 = vcmp.ge.f32.partialorder %v4240_v57, 0.0  ;;  %v3183_v23 = vmul.f32 %v4240_v57, %v5487_v59  ;;  %v4242_v27 = vadd.f32 %v4207_v17, %v5472_v8  ;;  %v3010_v34 = vpop.f32.mrb[11].mxu0 }
 0x23e   : > { %vm3143_vm13 = vcmp.ge.f32.partialorder %v4241_v16, 0.0  ;;  %v3181_v36 = vmul.f32 %v4241_v16, %v5487_v59  ;;  %v4243_v39 = vadd.f32 %v3010_v34, %v5474_v13 }
 0x23f   : > { %v3215_v54 = vsel %vm3145_vm12, %v4240_v57, %v3183_v23  ;;  %vm3146_vm14 = vcmp.ge.f32.partialorder %v4242_v27, 0.0  ;;  %v3184_v47 = vmul.f32 %v4242_v27, %v5487_v59 }
 0x240   : > { %v3719_v63 = vpack.c.bf16 %v3215_v54, %v3215_v54  ;;  %v3213_v50 = vsel %vm3143_vm13, %v4241_v16, %v3181_v36  ;;  %vm3144_vm15 = vcmp.ge.f32.partialorder %v4243_v39, 0.0  ;;  %v3182_v52 = vmul.f32 %v4243_v39, %v5487_v59 }
 0x241   : > { %v3717_v60 = vpack.c.bf16 %v3213_v50, %v3213_v50  ;;  %v3216_v5 = vsel %vm3146_vm14, %v4242_v27, %v3184_v47 }
 0x242   : > { %3376 = vst.msk [vmem:[%s5494_s29 + $0x28] sm:$0xf] %vm3365_vm5, %v3719_v63  ;;  %v3720_v8 = vpack.c.bf16 %v3216_v5, %v3216_v5  ;;  %v3214_v3 = vsel %vm3144_vm15, %v4243_v39, %v3182_v52  ;;  %v4210_v61 = vpop.f32.mrb[12].mxu0 }
 0x243   : > { %3374 = vst.msk [vmem:[%s5494_s29 + $0x20] sm:$0xf] %vm3365_vm5, %v3717_v60  ;;  %v3718_v13 = vpack.c.bf16 %v3214_v3, %v3214_v3  ;;  %v4244_v62 = vadd.f32 %v4210_v61, %v5476_v24  ;;  %v3023_v6 = vpop.f32.mrb[13].mxu0 }
 0x244   : > { %3377 = vst.msk [vmem:[%s5494_s29 + $0x2c] sm:$0xf] %vm3365_vm5, %v3720_v8  ;;  %v4245_v7 = vadd.f32 %v3023_v6, %v5478_v29  ;;  %v4211_v44 = vpop.f32.mrb[14].mxu0 }
 0x245   : > { %3375 = vst.msk [vmem:[%s5494_s29 + $0x24] sm:$0xf] %vm3365_vm5, %v3718_v13  ;;  %vm3149_vm0 = vcmp.ge.f32.partialorder %v4244_v62, 0.0  ;;  %v3187_v18 = vmul.f32 %v4244_v62, %v5487_v59  ;;  %v4246_v19 = vadd.f32 %v4211_v44, %v5480_v32  ;;  %v3026_v21 = vpop.f32.mrb[15].mxu0 }
 0x246   : > { %vm3147_vm1 = vcmp.ge.f32.partialorder %v4245_v7, 0.0  ;;  %v3185_v22 = vmul.f32 %v4245_v7, %v5487_v59  ;;  %v4247_v24 = vadd.f32 %v3026_v21, %v5482_v41 }
 0x247   : > { %v3219_v26 = vsel %vm3149_vm0, %v4244_v62, %v3187_v18  ;;  %vm3150_vm2 = vcmp.ge.f32.partialorder %v4246_v19, 0.0  ;;  %v3188_v29 = vmul.f32 %v4246_v19, %v5487_v59 }
 0x248   : > { %v4070_v28 = vpop.f32.mrb[16].mxu1  ;;  %v3723_v37 = vpack.c.bf16 %v3219_v26, %v3219_v26  ;;  %v3217_v10 = vsel %vm3147_vm1, %v4245_v7, %v3185_v22  ;;  %vm3148_vm3 = vcmp.ge.f32.partialorder %v4247_v24, 0.0  ;;  %v3186_v14 = vmul.f32 %v4247_v24, %v5487_v59 }
 0x249   : > { %v1814_v32 = vpop.f32.mrb[17].mxu1  ;;  %v3721_v11 = vpack.c.bf16 %v3217_v10, %v3217_v10  ;;  %v3220_v12 = vsel %vm3150_vm2, %v4246_v19, %v3188_v29 }
 0x24a   : > { %v4071_v38 = vpop.f32.mrb[18].mxu1  ;;  %3380 = vst.msk [vmem:[%s5494_s29 + $0x38] sm:$0xf] %vm3365_vm5, %v3723_v37  ;;  %v3724_v41 = vpack.c.bf16 %v3220_v12, %v3220_v12  ;;  %v3218_v48 = vsel %vm3148_vm3, %v4247_v24, %v3186_v14  ;;  %v4214_v43 = vpop.f32.mrb[16].mxu0 }
 0x24b   : > { %v1817_v53 = vpop.f32.mrb[19].mxu1  ;;  %3378 = vst.msk [vmem:[%s5494_s29 + $0x30] sm:$0xf] %vm3365_vm5, %v3721_v11  ;;  %v3722_v55 = vpack.c.bf16 %v3218_v48, %v3218_v48  ;;  %v4248_v56 = vadd.f32 %v4214_v43, %v4070_v28  ;;  %v3039_v2 = vpop.f32.mrb[17].mxu0 }
 0x24c   : > { %3381 = vst.msk [vmem:[%s5494_s29 + $0x3c] sm:$0xf] %vm3365_vm5, %v3724_v41  ;;  %v4249_v30 = vadd.f32 %v3039_v2, %v1814_v32  ;;  %v4215_v35 = vpop.f32.mrb[18].mxu0 }
 0x24d   : > { %3379 = vst.msk [vmem:[%s5494_s29 + $0x34] sm:$0xf] %vm3365_vm5, %v3722_v55  ;;  %vm3153_vm4 = vcmp.ge.f32.partialorder %v4248_v56, 0.0  ;;  %v3191_v4 = vmul.f32 %v4248_v56, %v5487_v59  ;;  %v4250_v15 = vadd.f32 %v4215_v35, %v4071_v38  ;;  %v3042_v45 = vpop.f32.mrb[19].mxu0 }
 0x24e   : > { %vm3151_vm6 = vcmp.ge.f32.partialorder %v4249_v30, 0.0  ;;  %v3189_v0 = vmul.f32 %v4249_v30, %v5487_v59  ;;  %v4251_v1 = vadd.f32 %v3042_v45, %v1817_v53 }
 0x24f   : > { %v3223_v9 = vsel %vm3153_vm4, %v4248_v56, %v3191_v4  ;;  %vm3154_vm7 = vcmp.ge.f32.partialorder %v4250_v15, 0.0  ;;  %v3192_v20 = vmul.f32 %v4250_v15, %v5487_v59 }
 0x250   : > { %v4074_v25 = vpop.f32.mrb[20].mxu1  ;;  %v3727_v31 = vpack.c.bf16 %v3223_v9, %v3223_v9  ;;  %v3221_v33 = vsel %vm3151_vm6, %v4249_v30, %v3189_v0  ;;  %vm3152_vm8 = vcmp.ge.f32.partialorder %v4251_v1, 0.0  ;;  %v3190_v40 = vmul.f32 %v4251_v1, %v5487_v59 }
 0x251   : > { %v1830_v42 = vpop.f32.mrb[21].mxu1  ;;  %v3725_v46 = vpack.c.bf16 %v3221_v33, %v3221_v33  ;;  %v3224_v49 = vsel %vm3154_vm7, %v4250_v15, %v3192_v20 }
 0x252   : > { %v4075_v51 = vpop.f32.mrb[22].mxu1  ;;  %3384 = vst.msk [vmem:[%s5494_s29 + $0x48] sm:$0xf] %vm3365_vm5, %v3727_v31  ;;  %v3728_v57 = vpack.c.bf16 %v3224_v49, %v3224_v49  ;;  %v3222_v58 = vsel %vm3152_vm8, %v4251_v1, %v3190_v40  ;;  %v4218_v16 = vpop.f32.mrb[20].mxu0 }
 0x253   : > { %v1833_v17 = vpop.f32.mrb[23].mxu1  ;;  %3382 = vst.msk [vmem:[%s5494_s29 + $0x40] sm:$0xf] %vm3365_vm5, %v3725_v46  ;;  %v3726_v23 = vpack.c.bf16 %v3222_v58, %v3222_v58  ;;  %v4252_v27 = vadd.f32 %v4218_v16, %v4074_v25  ;;  %v3055_v34 = vpop.f32.mrb[21].mxu0 }
 0x254   : > { %3385 = vst.msk [vmem:[%s5494_s29 + $0x4c] sm:$0xf] %vm3365_vm5, %v3728_v57  ;;  %v4253_v36 = vadd.f32 %v3055_v34, %v1830_v42  ;;  %v4219_v39 = vpop.f32.mrb[22].mxu0 }
 0x255   : > { %3383 = vst.msk [vmem:[%s5494_s29 + $0x44] sm:$0xf] %vm3365_vm5, %v3726_v23  ;;  %vm3157_vm9 = vcmp.ge.f32.partialorder %v4252_v27, 0.0  ;;  %v3195_v54 = vmul.f32 %v4252_v27, %v5487_v59  ;;  %v4254_v47 = vadd.f32 %v4219_v39, %v4075_v51  ;;  %v3058_v63 = vpop.f32.mrb[23].mxu0 }
 0x256   : > { %vm3155_vm10 = vcmp.ge.f32.partialorder %v4253_v36, 0.0  ;;  %v3193_v50 = vmul.f32 %v4253_v36, %v5487_v59  ;;  %v4255_v52 = vadd.f32 %v3058_v63, %v1833_v17 }
 0x257   : > { %v3227_v60 = vsel %vm3157_vm9, %v4252_v27, %v3195_v54  ;;  %vm3158_vm11 = vcmp.ge.f32.partialorder %v4254_v47, 0.0  ;;  %v3196_v5 = vmul.f32 %v4254_v47, %v5487_v59 }
 0x258   : > { %v4078_v8 = vpop.f32.mrb[24].mxu1  ;;  %v3731_v3 = vpack.c.bf16 %v3227_v60, %v3227_v60  ;;  %v3225_v61 = vsel %vm3155_vm10, %v4253_v36, %v3193_v50  ;;  %vm3156_vm12 = vcmp.ge.f32.partialorder %v4255_v52, 0.0  ;;  %v3194_v13 = vmul.f32 %v4255_v52, %v5487_v59 }
 0x259   : > { %v1846_v62 = vpop.f32.mrb[25].mxu1  ;;  %v3729_v6 = vpack.c.bf16 %v3225_v61, %v3225_v61  ;;  %v3228_v7 = vsel %vm3158_vm11, %v4254_v47, %v3196_v5 }
 0x25a   : > { %v4079_v44 = vpop.f32.mrb[26].mxu1  ;;  %3388 = vst.msk [vmem:[%s5494_s29 + $0x58] sm:$0xf] %vm3365_vm5, %v3731_v3  ;;  %v3732_v18 = vpack.c.bf16 %v3228_v7, %v3228_v7  ;;  %v3226_v19 = vsel %vm3156_vm12, %v4255_v52, %v3194_v13  ;;  %v4222_v21 = vpop.f32.mrb[24].mxu0 }
 0x25b   : > { %v1849_v22 = vpop.f32.mrb[27].mxu1  ;;  %3386 = vst.msk [vmem:[%s5494_s29 + $0x50] sm:$0xf] %vm3365_vm5, %v3729_v6  ;;  %v3730_v24 = vpack.c.bf16 %v3226_v19, %v3226_v19  ;;  %v4256_v26 = vadd.f32 %v4222_v21, %v4078_v8  ;;  %v3071_v29 = vpop.f32.mrb[25].mxu0 }
 0x25c   : > { %3389 = vst.msk [vmem:[%s5494_s29 + $0x5c] sm:$0xf] %vm3365_vm5, %v3732_v18  ;;  %v4257_v28 = vadd.f32 %v3071_v29, %v1846_v62  ;;  %v4223_v37 = vpop.f32.mrb[26].mxu0 }
 0x25d   : > { %3387 = vst.msk [vmem:[%s5494_s29 + $0x54] sm:$0xf] %vm3365_vm5, %v3730_v24  ;;  %vm3161_vm13 = vcmp.ge.f32.partialorder %v4256_v26, 0.0  ;;  %v3199_v10 = vmul.f32 %v4256_v26, %v5487_v59  ;;  %v4258_v14 = vadd.f32 %v4223_v37, %v4079_v44  ;;  %v3074_v32 = vpop.f32.mrb[27].mxu0 }
 0x25e   : > { %vm3159_vm14 = vcmp.ge.f32.partialorder %v4257_v28, 0.0  ;;  %v3197_v11 = vmul.f32 %v4257_v28, %v5487_v59  ;;  %v4259_v12 = vadd.f32 %v3074_v32, %v1849_v22 }
 0x25f   : > { %v3231_v38 = vsel %vm3161_vm13, %v4256_v26, %v3199_v10  ;;  %vm3162_vm15 = vcmp.ge.f32.partialorder %v4258_v14, 0.0  ;;  %v3200_v41 = vmul.f32 %v4258_v14, %v5487_v59 }
 0x260   : > { %v4082_v48 = vpop.f32.mrb[28].mxu1  ;;  %v3735_v43 = vpack.c.bf16 %v3231_v38, %v3231_v38  ;;  %v3229_v53 = vsel %vm3159_vm14, %v4257_v28, %v3197_v11  ;;  %vm3160_vm0 = vcmp.ge.f32.partialorder %v4259_v12, 0.0  ;;  %v3198_v55 = vmul.f32 %v4259_v12, %v5487_v59 }
 0x261   : > { %v1862_v56 = vpop.f32.mrb[29].mxu1  ;;  %v3733_v2 = vpack.c.bf16 %v3229_v53, %v3229_v53  ;;  %v3232_v30 = vsel %vm3162_vm15, %v4258_v14, %v3200_v41 }
 0x262   : > { %v4083_v35 = vpop.f32.mrb[30].mxu1  ;;  %3392 = vst.msk [vmem:[%s5494_s29 + $0x68] sm:$0xf] %vm3365_vm5, %v3735_v43  ;;  %v3736_v4 = vpack.c.bf16 %v3232_v30, %v3232_v30  ;;  %v3230_v15 = vsel %vm3160_vm0, %v4259_v12, %v3198_v55  ;;  %v4226_v45 = vpop.f32.mrb[28].mxu0 }
 0x263   : > { %v1865_v0 = vpop.f32.mrb[31].mxu1  ;;  %3390 = vst.msk [vmem:[%s5494_s29 + $0x60] sm:$0xf] %vm3365_vm5, %v3733_v2  ;;  %v3734_v1 = vpack.c.bf16 %v3230_v15, %v3230_v15  ;;  %v4260_v9 = vadd.f32 %v4226_v45, %v4082_v48  ;;  %v3087_v20 = vpop.f32.mrb[29].mxu0 }
 0x264   : > { %3393 = vst.msk [vmem:[%s5494_s29 + $0x6c] sm:$0xf] %vm3365_vm5, %v3736_v4  ;;  %v4261_v25 = vadd.f32 %v3087_v20, %v1862_v56  ;;  %v4227_v31 = vpop.f32.mrb[30].mxu0 }
 0x265   : > { %3391 = vst.msk [vmem:[%s5494_s29 + $0x64] sm:$0xf] %vm3365_vm5, %v3734_v1  ;;  %vm3165_vm1 = vcmp.ge.f32.partialorder %v4260_v9, 0.0  ;;  %v3203_v33 = vmul.f32 %v4260_v9, %v5487_v59  ;;  %v4262_v40 = vadd.f32 %v4227_v31, %v4083_v35  ;;  %v3090_v42 = vpop.f32.mrb[31].mxu0 }
 0x266   : > { %vm3163_vm2 = vcmp.ge.f32.partialorder %v4261_v25, 0.0  ;;  %v3201_v46 = vmul.f32 %v4261_v25, %v5487_v59  ;;  %v4263_v49 = vadd.f32 %v3090_v42, %v1865_v0 }
 0x267   : > { %v3235_v51 = vsel %vm3165_vm1, %v4260_v9, %v3203_v33  ;;  %vm3166_vm3 = vcmp.ge.f32.partialorder %v4262_v40, 0.0  ;;  %v3204_v57 = vmul.f32 %v4262_v40, %v5487_v59 }
 0x268   : > { %v3739_v58 = vpack.c.bf16 %v3235_v51, %v3235_v51  ;;  %v3233_v16 = vsel %vm3163_vm2, %v4261_v25, %v3201_v46  ;;  %vm3164_vm4 = vcmp.ge.f32.partialorder %v4263_v49, 0.0  ;;  %v3202_v17 = vmul.f32 %v4263_v49, %v5487_v59 }
 0x269   : > { %v3737_v23 = vpack.c.bf16 %v3233_v16, %v3233_v16  ;;  %v3236_v27 = vsel %vm3166_vm3, %v4262_v40, %v3204_v57 }
 0x26a   : > { %3396 = vst.msk [vmem:[%s5494_s29 + $0x78] sm:$0xf] %vm3365_vm5, %v3739_v58  ;;  %v3740_v34 = vpack.c.bf16 %v3236_v27, %v3236_v27  ;;  %v3234_v36 = vsel %vm3164_vm4, %v4263_v49, %v3202_v17 }
 0x26b   : > { %3394 = vst.msk [vmem:[%s5494_s29 + $0x70] sm:$0xf] %vm3365_vm5, %v3737_v23  ;;  %v3738_v39 = vpack.c.bf16 %v3234_v36, %v3234_v36 }
 0x26c   : > { %3397 = vst.msk [vmem:[%s5494_s29 + $0x7c] sm:$0xf] %vm3365_vm5, %v3740_v34 }
 0x26d   : > { %3395 = vst.msk [vmem:[%s5494_s29 + $0x74] sm:$0xf] %vm3365_vm5, %v3738_v39 }
 0x26e   : > { %4641 = shalt.err (!%p4638_p7)
}
 0x26f   : > { %s4642_s14 = scalar_lea.hbm %s5595_s27, 2048  ;;  %s4646_s15 = scalar_lea.hbm %s5652_s5, 4096 }
 0x270   : > { %p4643_p9 = scmp.ne.s32.totalorder %s5595_s27, %s4642_s14  ;;  %p4647_p5 = scmp.lt.u32.totalorder %s5595_s27, %s5652_s5 }
 0x271   : > { %p4648_p11 = scmp.lt.u32.totalorder %s4646_s15, %s4642_s14  ;;  %p4650_p4 = scmp.lt.u32.totalorder %s4642_s14, %s5595_s27 }
 0x272   : > { %p4644_p2 = pnand %p4643_p9, %p4831_p12 }
 0x273   : > { %p4649_p1 = por %p4648_p11, %p4647_p5 }
 0x274   : > { %p4645_p0 = pneg %p4644_p2 }
 0x275   : > { %p4651_p6 = por %p4650_p4, %p4649_p1 }
 0x277   : > { %p4652_p8 = pnand %p4651_p6, %p4645_p0 }
 0x279   : > { %4655 = shalt.err (!%p4652_p8)
}
 0x27a   : > { %s4708_s13 = smov 64   ;;  %s4709_s16 = smov 4  }
 0x27b   : > { %4494 = dma.vmem_to_hbm [thread:$0]  (%p4831_p12), %s5597_s28, 2048, %s5595_s27, %s3399_s22, %s4708_s13, %s4708_s13, %s4709_s16  }
 0x27c PF: > { %s3427_s17 = sand.u32 1, %s4686_s18   ;;  %p5667_p10 = scmp.ne.s32.totalorder %s5657_s25, 0 }
 0x27d   : > { %p5668_p13 = scmp.ge.s32.totalorder %s4698_s21, 2  ;;  %s3428_s11 = scalar_lea.sflag [#allocation5], %s3427_s17 }
 0x27f   : > { %p4505_p3 = pnand %p5668_p13, %p5667_p10 }
 0x281   : > { %4681 = dma.done.wait (!%p4505_p3), %s3428_s11, 2048  }
 0x282   : > { %4683 = vsyncadd (!%p4505_p3), %s3428_s11, 4294965248  ;;  %p19_p7 = scmp.ge.s32.totalorder %s4796_s30, 4   ;;  %s5669_s18 = smov %s4690_s19 }
 0x283   : > { %s5670_s19 = smov %s4694_s20  ;;  %s5671_s20 = smov %s4827_s8 }
 0x284   : > { %s5672_s21 = smov %s4796_s30  ;;  %21 = sbr.rel (!%p19_p7) target bundleno = 6 (0x6), region = 100 }
 0x28b   :  { %3433 = vsyncpa [#allocation4], 1 }
 0x28c   :  { %3435 = vsyncpa [#allocation4 + $0x1], 1 }
 0x28d   :  { %3436 = vsyncpa [#allocation7], 1 }
 0x28e   :  { %3437 = vsyncpa [#allocation5], 1 }
 0x28f   :  { %3439 = vsyncpa [#allocation5 + $0x1], 1 }

</bundles_post_ra>
